<compile_context>
chip_gen: v7x
topology: tpu7x:2x2x1
jax: 0.10.0
libtpu: 0.0.40
codegen_flags: <defaults>
</compile_context>

<pallas_src>
import functools
import math

import jax
import jax.numpy as jnp
from jax import lax
from jax.experimental import pallas as pl
from jax.experimental.pallas import tpu as pltpu

_BF16 = jnp.bfloat16
_VMEM_LIMIT = 48 * 1024 * 1024      # safe ceiling for v7x (64 MiB physical VMEM / TC)


# ----------------------------------------------------------------------------
# Small helpers
# ----------------------------------------------------------------------------
def _round_up(x, m):
    return ((x + m - 1) // m) * m


def _pick_tile(dim, target, align):
    """Largest t <= target with t % align == 0 and dim % t == 0; else the full dim.

    Falling back to the full dim is always legal ("block equals full array dim").
    """
    if dim % align != 0:
        return dim
    t = min(target, dim)
    t -= t % align
    while t >= align:
        if dim % t == 0:
            return t
        t -= align
    return dim


def _erf(x):
    # Abramowitz & Stegun 7.1.26 rational approximation (|err| <= 1.5e-7 ~ f32 eps).
    # Keeps torch.nn.GELU() (exact erf) semantics; the exp() rides the EUP slot.
    a1, a2, a3, a4, a5 = 0.254829592, -0.284496736, 1.421413741, -1.453152027, 1.061405429
    p = 0.3275911
    sign = jnp.where(x >= 0.0, 1.0, -1.0)
    ax = jnp.abs(x)
    t = 1.0 / (1.0 + p * ax)
    poly = ((((a5 * t + a4) * t + a3) * t + a2) * t + a1) * t
    return sign * (1.0 - poly * jnp.exp(-ax * ax))


# ----------------------------------------------------------------------------
# Pallas kernels
# ----------------------------------------------------------------------------
def _matmul_kernel(*refs, activation, has_residual, fuse_ln, ln_eps):
    """Tiled matmul, f32 accumulator.  Optional LayerNorm prologue (requires tk == K)
    and bias / exact-GELU / residual-add fused in the epilogue."""
    it = iter(refs)
    x_ref = next(it)
    if fuse_ln:
        g_ref = next(it)
        bln_ref = next(it)
    w_ref = next(it)
    b_ref = next(it)
    res_ref = next(it) if has_residual else None
    o_ref = next(it)
    acc_ref = next(it)

    @pl.when(pl.program_id(2) == 0)
    def _():
        acc_ref[...] = jnp.zeros_like(acc_ref)

    x = x_ref[...]
    if fuse_ln:
        # Whole feature row is in VMEM (single K step), so LN fuses as a prologue.
        xf = x.astype(jnp.float32)
        mu = jnp.mean(xf, axis=-1, keepdims=True)
        xc = xf - mu
        var = jnp.mean(xc * xc, axis=-1, keepdims=True)
        xn = xc * lax.rsqrt(var + ln_eps)
        x = (xn * g_ref[...].astype(jnp.float32)
             + bln_ref[...].astype(jnp.float32)).astype(x_ref.dtype)

    acc_ref[...] += jnp.dot(x, w_ref[...], preferred_element_type=jnp.float32)

    @pl.when(pl.program_id(2) == pl.num_programs(2) - 1)
    def _():
        out = acc_ref[...] + b_ref[...].astype(jnp.float32)
        if activation == "gelu":
            # exact (erf) GELU, matching torch.nn.GELU() default in the reference MLP
            out = 0.5 * out * (1.0 + _erf(out * 0.7071067811865476))
        if res_ref is not None:
            out = out + res_ref[...].astype(jnp.float32)
        o_ref[...] = out.astype(o_ref.dtype)


def _layernorm_kernel(x_ref, g_ref, b_ref, o_ref, *, eps):
    x = x_ref[...].astype(jnp.float32)                  # stats in f32
    mu = jnp.mean(x, axis=-1, keepdims=True)
    xc = x - mu
    var = jnp.mean(xc * xc, axis=-1, keepdims=True)
    y = xc * lax.rsqrt(var + eps)
    o_ref[...] = (y * g_ref[...].astype(jnp.float32)
                  + b_ref[...].astype(jnp.float32)).astype(o_ref.dtype)


def _flash_attn_kernel(q_ref, k_ref, v_ref, o_ref, m_sc, l_sc, acc_sc,
                       *, scale, kv_len, block_kv):
    """Online-softmax attention; one (batch, head, q_tile) owns the VMEM scratch.
    Q/K/V come in head-major (dh is the full minor dim -> contiguous K/V DMAs)."""
    ki = pl.program_id(3)

    @pl.when(ki == 0)
    def _():
        m_sc[...] = jnp.full_like(m_sc, -1e30)
        l_sc[...] = jnp.zeros_like(l_sc)
        acc_sc[...] = jnp.zeros_like(acc_sc)

    q = q_ref[0, 0, 0]                                   # (tq,  dh) bf16
    k = k_ref[0, 0, 0]                                   # (tkv, dh) bf16
    v = v_ref[0, 0, 0]                                   # (tkv, dh) bf16
    s = lax.dot_general(q, k, (((1,), (1,)), ((), ())),
                        preferred_element_type=jnp.float32) * scale     # (tq, tkv) f32

    # Mask padded kv positions (sequence was zero-padded to a tile multiple).
    col = ki * block_kv + lax.broadcasted_iota(jnp.int32, s.shape, 1)
    valid = col < kv_len
    s = jnp.where(valid, s, -1e30)

    m_prev = m_sc[...]
    m_new = jnp.maximum(m_prev, jnp.max(s, axis=-1, keepdims=True))
    alpha = jnp.exp(m_prev - m_new)
    p = jnp.exp(s - m_new)
    p = jnp.where(valid, p, 0.0)          # robust even for a fully-padded kv tile
    l_sc[...] = alpha * l_sc[...] + jnp.sum(p, axis=-1, keepdims=True)
    acc_sc[...] = alpha * acc_sc[...] + jnp.dot(
        p.astype(v.dtype), v, preferred_element_type=jnp.float32)
    m_sc[...] = m_new

    @pl.when(ki == pl.num_programs(3) - 1)
    def _():
        o_ref[0, 0] = (acc_sc[...]
                       * pl.reciprocal(l_sc[...], approx=True)).astype(o_ref.dtype)


# ----------------------------------------------------------------------------
# Pallas wrappers
# ----------------------------------------------------------------------------
def matmul_bias(x, w, b, activation=None, residual=None, ln=None, ln_eps=1e-5):
    """out = [residual +] act( LN?(x) @ w + b ).  LN (if given) is fused as a prologue
    (forces a single K step so the whole feature row is resident in VMEM)."""
    M, K = x.shape
    K2, N = w.shape
    assert K == K2
    fuse_ln = ln is not None

    tm = _pick_tile(M, 512, 16)
    tn = _pick_tile(N, 2176, 128)
    tk = K if fuse_ln else _pick_tile(K, 2304, 128)

    in_specs = [pl.BlockSpec((tm, tk), lambda i, j, k: (i, k))]
    args = [x]
    if fuse_ln:
        gamma, beta = ln
        in_specs += [pl.BlockSpec((1, K), lambda i, j, k: (0, 0)),
                     pl.BlockSpec((1, K), lambda i, j, k: (0, 0))]
        args += [gamma.reshape(1, K).astype(jnp.float32),
                 beta.reshape(1, K).astype(jnp.float32)]
    in_specs += [pl.BlockSpec((tk, tn), lambda i, j, k: (k, j)),
                 pl.BlockSpec((1, tn), lambda i, j, k: (0, j))]
    args += [w, b.reshape(1, N).astype(jnp.float32)]
    if residual is not None:
        in_specs.append(pl.BlockSpec((tm, tn), lambda i, j, k: (i, j)))
        args.append(residual)

    kernel = functools.partial(_matmul_kernel, activation=activation,
                               has_residual=residual is not None,
                               fuse_ln=fuse_ln, ln_eps=ln_eps)
    return pl.pallas_call(
        kernel,
        out_shape=jax.ShapeDtypeStruct((M, N), _BF16),
        grid=(M // tm, N // tn, K // tk),
        in_specs=in_specs,
        out_specs=pl.BlockSpec((tm, tn), lambda i, j, k: (i, j)),
        scratch_shapes=[pltpu.VMEM((tm, tn), jnp.float32)],
        compiler_params=pltpu.CompilerParams(
            dimension_semantics=("parallel", "parallel", "arbitrary"),
            vmem_limit_bytes=_VMEM_LIMIT),
    )(*args)


def layernorm(x, gamma, beta, eps=1e-5):                 # nn.LayerNorm default eps
    M, N = x.shape
    tm = _pick_tile(M, 1024, 16)
    kernel = functools.partial(_layernorm_kernel, eps=eps)
    return pl.pallas_call(
        kernel,
        out_shape=jax.ShapeDtypeStruct((M, N), x.dtype),
        grid=(M // tm,),
        in_specs=[pl.BlockSpec((tm, N), lambda i: (i, 0)),
                  pl.BlockSpec((1, N), lambda i: (0, 0)),
                  pl.BlockSpec((1, N), lambda i: (0, 0))],
        out_specs=pl.BlockSpec((tm, N), lambda i: (i, 0)),
        compiler_params=pltpu.CompilerParams(dimension_semantics=("parallel",)),
    )(x, gamma.reshape(1, N).astype(jnp.float32), beta.reshape(1, N).astype(jnp.float32))


def flash_attention(qkv, *, kv_len, scale):
    """qkv: (3, B, nh, S_pad, dh) head-major (unpadded dh).  Returns (B, nh, S_pad, dh)."""
    _, B, nh, S_pad, dh = qkv.shape
    tq = _pick_tile(S_pad, 1536, 16)     # big q tile -> K/V HBM traffic ~ S/tq per head
    tkv = _pick_tile(S_pad, 512, 16)

    q_spec = pl.BlockSpec((1, 1, 1, tq, dh), lambda b, h, qi, ki: (0, b, h, qi, 0))
    k_spec = pl.BlockSpec((1, 1, 1, tkv, dh), lambda b, h, qi, ki: (1, b, h, ki, 0))
    v_spec = pl.BlockSpec((1, 1, 1, tkv, dh), lambda b, h, qi, ki: (2, b, h, ki, 0))
    o_spec = pl.BlockSpec((1, 1, tq, dh), lambda b, h, qi, ki: (b, h, qi, 0))

    kernel = functools.partial(_flash_attn_kernel, scale=scale,
                               kv_len=kv_len, block_kv=tkv)
    return pl.pallas_call(
        kernel,
        out_shape=jax.ShapeDtypeStruct((B, nh, S_pad, dh), qkv.dtype),
        grid=(B, nh, S_pad // tq, S_pad // tkv),
        in_specs=[q_spec, k_spec, v_spec],
        out_specs=o_spec,
        scratch_shapes=[pltpu.VMEM((tq, 1), jnp.float32),        # running max
                        pltpu.VMEM((tq, 1), jnp.float32),        # running sum
                        pltpu.VMEM((tq, dh), jnp.float32)],      # output accumulator
        compiler_params=pltpu.CompilerParams(
            dimension_semantics=("parallel", "parallel", "parallel", "arbitrary"),
            vmem_limit_bytes=_VMEM_LIMIT),
    )(qkv, qkv, qkv)


# ----------------------------------------------------------------------------
# Model: parameter init + forward
# ----------------------------------------------------------------------------
def init_params(key, cfg):
    E = cfg["hidden_size"]
    I = cfg["intermediate_size"]
    # Pad intermediate_size once so fc1/fc2 tiles stay 128/256-aligned (4304 -> 4352).
    I_pad = _round_up(I, 256) if I >= 256 else I
    P = cfg["patch_size"]
    Np = (cfg["image_size"] // P) ** 2

    def nrm(k, shape, scale=0.02):
        return (scale * jax.random.normal(k, shape)).astype(jnp.float32)

    keys = iter(jax.random.split(key, 3 + 8 * cfg["num_hidden_layers"]))

    params = {
        # stride==kernel Conv2d(3, E, P, P, bias=False) rewritten as a (3*P*P, E) matmul
        "patch_w": nrm(next(keys), (3 * P * P, E)).astype(_BF16),
        "patch_b": jnp.zeros((E,), jnp.float32),                       # bias=False
        "class_embedding": jax.random.normal(next(keys), (1, 1, E), dtype=jnp.float32),
        "positional_embedding": jax.random.normal(next(keys), (1, Np + 1, E),
                                                  dtype=jnp.float32),
        "pre_ln_g": jnp.ones((E,), jnp.float32), "pre_ln_b": jnp.zeros((E,), jnp.float32),
        "post_ln_g": jnp.ones((E,), jnp.float32), "post_ln_b": jnp.zeros((E,), jnp.float32),
        "layers": [],
    }

    for _ in range(cfg["num_hidden_layers"]):
        lp = {
            "attn_ln_g": jnp.ones((E,), jnp.float32), "attn_ln_b": jnp.zeros((E,), jnp.float32),
            # Unpadded fused qkv: columns laid out as (3, nh, dh) so a plain reshape
            # recovers Q/K/V head-major after the matmul.
            "qkv_w": nrm(next(keys), (E, 3 * E)).astype(_BF16),
            "qkv_b": nrm(next(keys), (3 * E,)),
            "proj_w": nrm(next(keys), (E, E)).astype(_BF16),
            "proj_b": nrm(next(keys), (E,)),
            "mlp_ln_g": jnp.ones((E,), jnp.float32), "mlp_ln_b": jnp.zeros((E,), jnp.float32),
            "fc1_w": jnp.pad(nrm(next(keys), (E, I)), ((0, 0), (0, I_pad - I))).astype(_BF16),
            "fc1_b": jnp.pad(nrm(next(keys), (I,)), (0, I_pad - I)),
            "fc2_w": jnp.pad(nrm(next(keys), (I, E)), ((0, I_pad - I), (0, 0))).astype(_BF16),
            "fc2_b": nrm(next(keys), (E,)),
        }
        params["layers"].append(lp)
    return params


def siglip_vision_forward(pixel_values, params, cfg):
    B, C, H, W = pixel_values.shape
    P = cfg["patch_size"]
    E = cfg["hidden_size"]
    nh = cfg["num_attention_heads"]
    dh = E // nh
    Hp, Wp = H // P, W // P
    Np = Hp * Wp
    S = Np + 1
    scale = 1.0 / math.sqrt(dh)

    # --- patch embedding: stride==kernel Conv2d as patch-extraction + Pallas matmul ---
    patches = pixel_values.reshape(B, C, Hp, P, Wp, P)
    patches = patches.transpose(0, 2, 4, 1, 3, 5).reshape(B * Np, C * P * P)
    x = matmul_bias(patches.astype(_BF16), params["patch_w"], params["patch_b"])
    x = x.reshape(B, Np, E)

    # --- class token + positional embedding ---
    cls = jnp.broadcast_to(params["class_embedding"], (B, 1, E)).astype(_BF16)
    x = jnp.concatenate([cls, x], axis=1)                              # (B, S, E)
    x = x + params["positional_embedding"].astype(_BF16)

    # --- pad sequence once (128-multiple for real sizes; padded kv masked in attention) ---
    S_pad = _round_up(S, 128) if S >= 128 else _round_up(S, 16)
    if S_pad > S:
        x = jnp.pad(x, ((0, 0), (0, S_pad - S), (0, 0)))
    M = B * S_pad

    # --- pre layernorm (standalone: its output is the residual stream) ---
    x2 = layernorm(x.reshape(M, E), params["pre_ln_g"], params["pre_ln_b"])

    # --- transformer layers ---
    for lp in params["layers"]:
        # attention block: attn_ln fused into the qkv matmul prologue,
        # residual add fused into the out-proj matmul epilogue.
        qkv = matmul_bias(x2, lp["qkv_w"], lp["qkv_b"],
                          ln=(lp["attn_ln_g"], lp["attn_ln_b"]))       # (M, 3*E)
        # single cheap mem-bound repack to head-major (contiguous K/V DMA tiles)
        qkv = qkv.reshape(B, S_pad, 3, nh, dh).transpose(2, 0, 3, 1, 4)  # (3,B,nh,S_pad,dh)
        o = flash_attention(qkv, kv_len=S, scale=scale)                  # (B,nh,S_pad,dh)
        o = o.transpose(0, 2, 1, 3).reshape(M, E)
        x2 = matmul_bias(o, lp["proj_w"], lp["proj_b"], residual=x2)

        # mlp block: mlp_ln fused into fc1 prologue, residual fused into fc2 epilogue.
        h = matmul_bias(x2, lp["fc1_w"], lp["fc1_b"], activation="gelu",
                        ln=(lp["mlp_ln_g"], lp["mlp_ln_b"]))
        x2 = matmul_bias(h, lp["fc2_w"], lp["fc2_b"], residual=x2)

    # --- post layernorm ---
    x2 = layernorm(x2, params["post_ln_g"], params["post_ln_b"])
    out = x2.reshape(B, S_pad, E)[:, :S, :]
    return out.astype(jnp.float32)


# ----------------------------------------------------------------------------
if __name__ == "__main__":
    cfg = {
        "hidden_size": 32,
        "intermediate_size": 64,
        "num_attention_heads": 4,
        "num_hidden_layers": 2,
        "image_size": 16,
        "patch_size": 8,
    }

    key = jax.random.PRNGKey(0)
    kx, kp = jax.random.split(key)
    pixel_values = jax.random.normal(kx, (2, 3, cfg["image_size"], cfg["image_size"]),
                                     dtype=jnp.float32)
    params = init_params(kp, cfg)

    fwd = jax.jit(functools.partial(siglip_vision_forward, cfg=cfg))
    out = fwd(pixel_values, params)
    out = jax.block_until_ready(out)

    expected_seq = (cfg["image_size"] // cfg["patch_size"]) ** 2 + 1
    assert out.shape == (2, expected_seq, cfg["hidden_size"]), out.shape
    assert bool(jnp.all(jnp.isfinite(out)))
    print("KERNEL_OK")
</pallas_src>

<mosaic_0001>
module attributes {stable_mosaic.version = 11 : i64} {
  func.func @_matmul_kernel(%arg0: i32, %arg1: i32, %arg2: i32, %arg3: memref<8x192xbf16, #tpu.memory_space<vmem>>, %arg4: memref<192x32xbf16, #tpu.memory_space<vmem>>, %arg5: memref<1x32xf32, #tpu.memory_space<vmem>>, %arg6: memref<8x32xbf16, #tpu.memory_space<vmem>>, %arg7: memref<8x32xf32, #tpu.memory_space<vmem>>) attributes {dimension_semantics = [#tpu.dimension_semantics<parallel>, #tpu.dimension_semantics<parallel>, #tpu.dimension_semantics<arbitrary>], iteration_bounds = array<i64: 1, 1, 1>, scalar_prefetch = 0 : i64, scratch_operands = 1 : i64, tpu.core_type = #tpu.core_type<tc>, window_params = [{transform_indices = @transform_0, window_bounds = array<i64: 8, 192>}, {transform_indices = @transform_1, window_bounds = array<i64: 192, 32>}, {transform_indices = @transform_2, window_bounds = array<i64: 1, 32>}, {transform_indices = @transform_3, window_bounds = array<i64: 8, 32>}]} {
    %c0_i32 = arith.constant 0 : i32
    %0 = arith.cmpi eq, %arg2, %c0_i32 : i32
    %1 = arith.extui %0 : i1 to i32
    %c0_i32_0 = arith.constant 0 : i32
    %2 = arith.cmpi ne, %1, %c0_i32_0 : i32
    scf.if %2 {
      %cst_10 = arith.constant 0.000000e+00 : f32
      %12 = vector.broadcast %cst_10 : f32 to vector<8x32xf32>
      %c0_11 = arith.constant 0 : index
      %c0_12 = arith.constant 0 : index
      %13 = vector.load %arg7[%c0_11, %c0_12] : memref<8x32xf32, #tpu.memory_space<vmem>>, vector<8x32xf32>
      tpu.vector_store %arg7[%c0_11, %c0_12], %12 {strides = array<i32>} : memref<8x32xf32, #tpu.memory_space<vmem>>, vector<8x32xf32>,
    } else {
    }
    %c0 = arith.constant 0 : index
    %c0_1 = arith.constant 0 : index
    %3 = vector.load %arg3[%c0, %c0_1] : memref<8x192xbf16, #tpu.memory_space<vmem>>, vector<8x192xbf16>
    %c0_2 = arith.constant 0 : index
    %c0_3 = arith.constant 0 : index
    %4 = vector.load %arg7[%c0_2, %c0_3] : memref<8x32xf32, #tpu.memory_space<vmem>>, vector<8x32xf32>
    %c0_4 = arith.constant 0 : index
    %c0_5 = arith.constant 0 : index
    %5 = vector.load %arg4[%c0_4, %c0_5] : memref<192x32xbf16, #tpu.memory_space<vmem>>, vector<192x32xbf16>
    %cst = arith.constant dense<0.000000e+00> : vector<8x32xf32>
    %6 = tpu.matmul %3, %5, %cst {dimension_numbers = #tpu.dot_dimension_numbers<[1], [0], [0], [1], [0, 0, 1, 1], [], []>} : vector<8x192xbf16>, vector<192x32xbf16>, vector<8x32xf32> -> vector<8x32xf32>
    %7 = arith.addf %4, %6 : vector<8x32xf32>
    %c0_6 = arith.constant 0 : index
    %c0_7 = arith.constant 0 : index
    %8 = vector.load %arg7[%c0_6, %c0_7] : memref<8x32xf32, #tpu.memory_space<vmem>>, vector<8x32xf32>
    tpu.vector_store %arg7[%c0_6, %c0_7], %7 {strides = array<i32>} : memref<8x32xf32, #tpu.memory_space<vmem>>, vector<8x32xf32>,
    %c0_i32_8 = arith.constant 0 : i32
    %9 = arith.cmpi eq, %arg2, %c0_i32_8 : i32
    %10 = arith.extui %9 : i1 to i32
    %c0_i32_9 = arith.constant 0 : i32
    %11 = arith.cmpi ne, %10, %c0_i32_9 : i32
    scf.if %11 {
      %c0_10 = arith.constant 0 : index
      %c0_11 = arith.constant 0 : index
      %12 = vector.load %arg7[%c0_10, %c0_11] : memref<8x32xf32, #tpu.memory_space<vmem>>, vector<8x32xf32>
      %c0_12 = arith.constant 0 : index
      %c0_13 = arith.constant 0 : index
      %13 = vector.load %arg5[%c0_12, %c0_13] : memref<1x32xf32, #tpu.memory_space<vmem>>, vector<1x32xf32>
      %14 = vector.broadcast %13 : vector<1x32xf32> to vector<8x32xf32>
      %15 = arith.addf %12, %14 : vector<8x32xf32>
      %16 = arith.truncf %15 : vector<8x32xf32> to vector<8x32xbf16>
      %c0_14 = arith.constant 0 : index
      %c0_15 = arith.constant 0 : index
      %17 = vector.load %arg6[%c0_14, %c0_15] : memref<8x32xbf16, #tpu.memory_space<vmem>>, vector<8x32xbf16>
      tpu.vector_store %arg6[%c0_14, %c0_15], %16 {strides = array<i32>} : memref<8x32xbf16, #tpu.memory_space<vmem>>, vector<8x32xbf16>,
    } else {
    }
    return
  }
  func.func @transform_0(%arg0: i32, %arg1: i32, %arg2: i32) -> (i32, i32) {
    %c0_i32 = arith.constant 0 : i32
    return %arg0, %arg2 : i32, i32
  }
  func.func @transform_1(%arg0: i32, %arg1: i32, %arg2: i32) -> (i32, i32) {
    %c0_i32 = arith.constant 0 : i32
    return %arg2, %arg1 : i32, i32
  }
  func.func @transform_2(%arg0: i32, %arg1: i32, %arg2: i32) -> (i32, i32) {
    %c0_i32 = arith.constant 0 : i32
    %c0_i32_0 = arith.constant 0 : i32
    return %c0_i32, %arg1 : i32, i32
  }
  func.func @transform_3(%arg0: i32, %arg1: i32, %arg2: i32) -> (i32, i32) {
    %c0_i32 = arith.constant 0 : i32
    return %arg0, %arg1 : i32, i32
  }
}

module attributes {stable_mosaic.version = 11 : i64} {
  func.func @_layernorm_kernel(%arg0: i32, %arg1: memref<32x32xbf16, #tpu.memory_space<vmem>>, %arg2: memref<1x32xf32, #tpu.memory_space<vmem>>, %arg3: memref<1x32xf32, #tpu.memory_space<vmem>>, %arg4: memref<32x32xbf16, #tpu.memory_space<vmem>>) attributes {dimension_semantics = [#tpu.dimension_semantics<parallel>], iteration_bounds = array<i64: 1>, scalar_prefetch = 0 : i64, scratch_operands = 0 : i64, tpu.core_type = #tpu.core_type<tc>, window_params = [{transform_indices = @transform_0, window_bounds = array<i64: 32, 32>}, {pipeline_mode = #tpu.pipeline_mode<synchronous>, transform_indices = @transform_1, window_bounds = array<i64: 1, 32>}, {pipeline_mode = #tpu.pipeline_mode<synchronous>, transform_indices = @transform_2, window_bounds = array<i64: 1, 32>}, {transform_indices = @transform_3, window_bounds = array<i64: 32, 32>}]} {
    %c0 = arith.constant 0 : index
    %c0_0 = arith.constant 0 : index
    %0 = vector.load %arg1[%c0, %c0_0] : memref<32x32xbf16, #tpu.memory_space<vmem>>, vector<32x32xbf16>
    %1 = arith.extf %0 : vector<32x32xbf16> to vector<32x32xf32>
    %cst = arith.constant dense<0.000000e+00> : vector<32xf32>
    %2 = vector.multi_reduction <add>, %1, %cst [1] : vector<32x32xf32> to vector<32xf32>
    %3 = vector.shape_cast %2 : vector<32xf32> to vector<32x1xf32>
    %cst_1 = arith.constant 3.200000e+01 : f32
    %4 = vector.broadcast %cst_1 : f32 to vector<32x1xf32>
    %5 = arith.divf %3, %4 : vector<32x1xf32>
    %6 = vector.broadcast %5 : vector<32x1xf32> to vector<32x32xf32>
    %7 = arith.subf %1, %6 : vector<32x32xf32>
    %8 = arith.mulf %7, %7 : vector<32x32xf32>
    %cst_2 = arith.constant dense<0.000000e+00> : vector<32xf32>
    %9 = vector.multi_reduction <add>, %8, %cst_2 [1] : vector<32x32xf32> to vector<32xf32>
    %10 = vector.shape_cast %9 : vector<32xf32> to vector<32x1xf32>
    %cst_3 = arith.constant 3.200000e+01 : f32
    %11 = vector.broadcast %cst_3 : f32 to vector<32x1xf32>
    %12 = arith.divf %10, %11 : vector<32x1xf32>
    %cst_4 = arith.constant 9.99999974E-6 : f32
    %13 = vector.broadcast %cst_4 : f32 to vector<32x1xf32>
    %14 = arith.addf %12, %13 : vector<32x1xf32>
    %15 = math.rsqrt %14 : vector<32x1xf32>
    %16 = vector.broadcast %15 : vector<32x1xf32> to vector<32x32xf32>
    %17 = arith.mulf %7, %16 : vector<32x32xf32>
    %c0_5 = arith.constant 0 : index
    %c0_6 = arith.constant 0 : index
    %18 = vector.load %arg2[%c0_5, %c0_6] : memref<1x32xf32, #tpu.memory_space<vmem>>, vector<1x32xf32>
    %19 = vector.broadcast %18 : vector<1x32xf32> to vector<32x32xf32>
    %20 = arith.mulf %17, %19 : vector<32x32xf32>
    %c0_7 = arith.constant 0 : index
    %c0_8 = arith.constant 0 : index
    %21 = vector.load %arg3[%c0_7, %c0_8] : memref<1x32xf32, #tpu.memory_space<vmem>>, vector<1x32xf32>
    %22 = vector.broadcast %21 : vector<1x32xf32> to vector<32x32xf32>
    %23 = arith.addf %20, %22 : vector<32x32xf32>
    %24 = arith.truncf %23 : vector<32x32xf32> to vector<32x32xbf16>
    %c0_9 = arith.constant 0 : index
    %c0_10 = arith.constant 0 : index
    %25 = vector.load %arg4[%c0_9, %c0_10] : memref<32x32xbf16, #tpu.memory_space<vmem>>, vector<32x32xbf16>
    tpu.vector_store %arg4[%c0_9, %c0_10], %24 {strides = array<i32>} : memref<32x32xbf16, #tpu.memory_space<vmem>>, vector<32x32xbf16>,
    return
  }
  func.func @transform_0(%arg0: i32) -> (i32, i32) {
    %c0_i32 = arith.constant 0 : i32
    %c0_i32_0 = arith.constant 0 : i32
    return %arg0, %c0_i32 : i32, i32
  }
  func.func @transform_1(%arg0: i32) -> (i32, i32) {
    %c0_i32 = arith.constant 0 : i32
    %c0_i32_0 = arith.constant 0 : i32
    %c0_i32_1 = arith.constant 0 : i32
    return %c0_i32, %c0_i32_0 : i32, i32
  }
  func.func @transform_2(%arg0: i32) -> (i32, i32) {
    %c0_i32 = arith.constant 0 : i32
    %c0_i32_0 = arith.constant 0 : i32
    %c0_i32_1 = arith.constant 0 : i32
    return %c0_i32, %c0_i32_0 : i32, i32
  }
  func.func @transform_3(%arg0: i32) -> (i32, i32) {
    %c0_i32 = arith.constant 0 : i32
    %c0_i32_0 = arith.constant 0 : i32
    return %arg0, %c0_i32 : i32, i32
  }
}

module attributes {stable_mosaic.version = 11 : i64} {
  func.func @_matmul_kernel(%arg0: i32, %arg1: i32, %arg2: i32, %arg3: memref<32x32xbf16, #tpu.memory_space<vmem>>, %arg4: memref<1x32xf32, #tpu.memory_space<vmem>>, %arg5: memref<1x32xf32, #tpu.memory_space<vmem>>, %arg6: memref<32x96xbf16, #tpu.memory_space<vmem>>, %arg7: memref<1x96xf32, #tpu.memory_space<vmem>>, %arg8: memref<32x96xbf16, #tpu.memory_space<vmem>>, %arg9: memref<32x96xf32, #tpu.memory_space<vmem>>) attributes {dimension_semantics = [#tpu.dimension_semantics<parallel>, #tpu.dimension_semantics<parallel>, #tpu.dimension_semantics<arbitrary>], iteration_bounds = array<i64: 1, 1, 1>, scalar_prefetch = 0 : i64, scratch_operands = 1 : i64, tpu.core_type = #tpu.core_type<tc>, window_params = [{transform_indices = @transform_0, window_bounds = array<i64: 32, 32>}, {pipeline_mode = #tpu.pipeline_mode<synchronous>, transform_indices = @transform_1, window_bounds = array<i64: 1, 32>}, {pipeline_mode = #tpu.pipeline_mode<synchronous>, transform_indices = @transform_2, window_bounds = array<i64: 1, 32>}, {transform_indices = @transform_3, window_bounds = array<i64: 32, 96>}, {transform_indices = @transform_4, window_bounds = array<i64: 1, 96>}, {transform_indices = @transform_5, window_bounds = array<i64: 32, 96>}]} {
    %c0_i32 = arith.constant 0 : i32
    %0 = arith.cmpi eq, %arg2, %c0_i32 : i32
    %1 = arith.extui %0 : i1 to i32
    %c0_i32_0 = arith.constant 0 : i32
    %2 = arith.cmpi ne, %1, %c0_i32_0 : i32
    scf.if %2 {
      %cst_19 = arith.constant 0.000000e+00 : f32
      %36 = vector.broadcast %cst_19 : f32 to vector<32x96xf32>
      %c0_20 = arith.constant 0 : index
      %c0_21 = arith.constant 0 : index
      %37 = vector.load %arg9[%c0_20, %c0_21] : memref<32x96xf32, #tpu.memory_space<vmem>>, vector<32x96xf32>
      tpu.vector_store %arg9[%c0_20, %c0_21], %36 {strides = array<i32>} : memref<32x96xf32, #tpu.memory_space<vmem>>, vector<32x96xf32>,
    } else {
    }
    %c0 = arith.constant 0 : index
    %c0_1 = arith.constant 0 : index
    %3 = vector.load %arg3[%c0, %c0_1] : memref<32x32xbf16, #tpu.memory_space<vmem>>, vector<32x32xbf16>
    %4 = arith.extf %3 : vector<32x32xbf16> to vector<32x32xf32>
    %cst = arith.constant dense<0.000000e+00> : vector<32xf32>
    %5 = vector.multi_reduction <add>, %4, %cst [1] : vector<32x32xf32> to vector<32xf32>
    %6 = vector.shape_cast %5 : vector<32xf32> to vector<32x1xf32>
    %cst_2 = arith.constant 3.200000e+01 : f32
    %7 = vector.broadcast %cst_2 : f32 to vector<32x1xf32>
    %8 = arith.divf %6, %7 : vector<32x1xf32>
    %9 = vector.broadcast %8 : vector<32x1xf32> to vector<32x32xf32>
    %10 = arith.subf %4, %9 : vector<32x32xf32>
    %11 = arith.mulf %10, %10 : vector<32x32xf32>
    %cst_3 = arith.constant dense<0.000000e+00> : vector<32xf32>
    %12 = vector.multi_reduction <add>, %11, %cst_3 [1] : vector<32x32xf32> to vector<32xf32>
    %13 = vector.shape_cast %12 : vector<32xf32> to vector<32x1xf32>
    %cst_4 = arith.constant 3.200000e+01 : f32
    %14 = vector.broadcast %cst_4 : f32 to vector<32x1xf32>
    %15 = arith.divf %13, %14 : vector<32x1xf32>
    %cst_5 = arith.constant 9.99999974E-6 : f32
    %16 = vector.broadcast %cst_5 : f32 to vector<32x1xf32>
    %17 = arith.addf %15, %16 : vector<32x1xf32>
    %18 = math.rsqrt %17 : vector<32x1xf32>
    %19 = vector.broadcast %18 : vector<32x1xf32> to vector<32x32xf32>
    %20 = arith.mulf %10, %19 : vector<32x32xf32>
    %c0_6 = arith.constant 0 : index
    %c0_7 = arith.constant 0 : index
    %21 = vector.load %arg4[%c0_6, %c0_7] : memref<1x32xf32, #tpu.memory_space<vmem>>, vector<1x32xf32>
    %22 = vector.broadcast %21 : vector<1x32xf32> to vector<32x32xf32>
    %23 = arith.mulf %20, %22 : vector<32x32xf32>
    %c0_8 = arith.constant 0 : index
    %c0_9 = arith.constant 0 : index
    %24 = vector.load %arg5[%c0_8, %c0_9] : memref<1x32xf32, #tpu.memory_space<vmem>>, vector<1x32xf32>
    %25 = vector.broadcast %24 : vector<1x32xf32> to vector<32x32xf32>
    %26 = arith.addf %23, %25 : vector<32x32xf32>
    %27 = arith.truncf %26 : vector<32x32xf32> to vector<32x32xbf16>
    %c0_10 = arith.constant 0 : index
    %c0_11 = arith.constant 0 : index
    %28 = vector.load %arg9[%c0_10, %c0_11] : memref<32x96xf32, #tpu.memory_space<vmem>>, vector<32x96xf32>
    %c0_12 = arith.constant 0 : index
    %c0_13 = arith.constant 0 : index
    %29 = vector.load %arg6[%c0_12, %c0_13] : memref<32x96xbf16, #tpu.memory_space<vmem>>, vector<32x96xbf16>
    %cst_14 = arith.constant dense<0.000000e+00> : vector<32x96xf32>
    %30 = tpu.matmul %27, %29, %cst_14 {dimension_numbers = #tpu.dot_dimension_numbers<[1], [0], [0], [1], [0, 0, 1, 1], [], []>} : vector<32x32xbf16>, vector<32x96xbf16>, vector<32x96xf32> -> vector<32x96xf32>
    %31 = arith.addf %28, %30 : vector<32x96xf32>
    %c0_15 = arith.constant 0 : index
    %c0_16 = arith.constant 0 : index
    %32 = vector.load %arg9[%c0_15, %c0_16] : memref<32x96xf32, #tpu.memory_space<vmem>>, vector<32x96xf32>
    tpu.vector_store %arg9[%c0_15, %c0_16], %31 {strides = array<i32>} : memref<32x96xf32, #tpu.memory_space<vmem>>, vector<32x96xf32>,
    %c0_i32_17 = arith.constant 0 : i32
    %33 = arith.cmpi eq, %arg2, %c0_i32_17 : i32
    %34 = arith.extui %33 : i1 to i32
    %c0_i32_18 = arith.constant 0 : i32
    %35 = arith.cmpi ne, %34, %c0_i32_18 : i32
    scf.if %35 {
      %c0_19 = arith.constant 0 : index
      %c0_20 = arith.constant 0 : index
      %36 = vector.load %arg9[%c0_19, %c0_20] : memref<32x96xf32, #tpu.memory_space<vmem>>, vector<32x96xf32>
      %c0_21 = arith.constant 0 : index
      %c0_22 = arith.constant 0 : index
      %37 = vector.load %arg7[%c0_21, %c0_22] : memref<1x96xf32, #tpu.memory_space<vmem>>, vector<1x96xf32>
      %38 = vector.broadcast %37 : vector<1x96xf32> to vector<32x96xf32>
      %39 = arith.addf %36, %38 : vector<32x96xf32>
      %40 = arith.truncf %39 : vector<32x96xf32> to vector<32x96xbf16>
      %c0_23 = arith.constant 0 : index
      %c0_24 = arith.constant 0 : index
      %41 = vector.load %arg8[%c0_23, %c0_24] : memref<32x96xbf16, #tpu.memory_space<vmem>>, vector<32x96xbf16>
      tpu.vector_store %arg8[%c0_23, %c0_24], %40 {strides = array<i32>} : memref<32x96xbf16, #tpu.memory_space<vmem>>, vector<32x96xbf16>,
    } else {
    }
    return
  }
  func.func @transform_0(%arg0: i32, %arg1: i32, %arg2: i32) -> (i32, i32) {
    %c0_i32 = arith.constant 0 : i32
    return %arg0, %arg2 : i32, i32
  }
  func.func @transform_1(%arg0: i32, %arg1: i32, %arg2: i32) -> (i32, i32) {
    %c0_i32 = arith.constant 0 : i32
    %c0_i32_0 = arith.constant 0 : i32
    %c0_i32_1 = arith.constant 0 : i32
    return %c0_i32, %c0_i32_0 : i32, i32
  }
  func.func @transform_2(%arg0: i32, %arg1: i32, %arg2: i32) -> (i32, i32) {
    %c0_i32 = arith.constant 0 : i32
    %c0_i32_0 = arith.constant 0 : i32
    %c0_i32_1 = arith.constant 0 : i32
    return %c0_i32, %c0_i32_0 : i32, i32
  }
  func.func @transform_3(%arg0: i32, %arg1: i32, %arg2: i32) -> (i32, i32) {
    %c0_i32 = arith.constant 0 : i32
    return %arg2, %arg1 : i32, i32
  }
  func.func @transform_4(%arg0: i32, %arg1: i32, %arg2: i32) -> (i32, i32) {
    %c0_i32 = arith.constant 0 : i32
    %c0_i32_0 = arith.constant 0 : i32
    return %c0_i32, %arg1 : i32, i32
  }
  func.func @transform_5(%arg0: i32, %arg1: i32, %arg2: i32) -> (i32, i32) {
    %c0_i32 = arith.constant 0 : i32
    return %arg0, %arg1 : i32, i32
  }
}

module attributes {stable_mosaic.version = 11 : i64} {
  func.func @_flash_attn_kernel(%arg0: i32, %arg1: i32, %arg2: i32, %arg3: i32, %arg4: memref<1x1x1x16x8xbf16, #tpu.memory_space<vmem>>, %arg5: memref<1x1x1x16x8xbf16, #tpu.memory_space<vmem>>, %arg6: memref<1x1x1x16x8xbf16, #tpu.memory_space<vmem>>, %arg7: memref<1x1x16x8xbf16, #tpu.memory_space<vmem>>, %arg8: memref<16x1xf32, #tpu.memory_space<vmem>>, %arg9: memref<16x1xf32, #tpu.memory_space<vmem>>, %arg10: memref<16x8xf32, #tpu.memory_space<vmem>>) attributes {dimension_semantics = [#tpu.dimension_semantics<parallel>, #tpu.dimension_semantics<parallel>, #tpu.dimension_semantics<parallel>, #tpu.dimension_semantics<arbitrary>], iteration_bounds = array<i64: 2, 4, 1, 1>, scalar_prefetch = 0 : i64, scratch_operands = 3 : i64, tpu.core_type = #tpu.core_type<tc>, window_params = [{transform_indices = @transform_0, window_bounds = array<i64: 1, 1, 1, 16, 8>}, {transform_indices = @transform_1, window_bounds = array<i64: 1, 1, 1, 16, 8>}, {transform_indices = @transform_2, window_bounds = array<i64: 1, 1, 1, 16, 8>}, {transform_indices = @transform_3, window_bounds = array<i64: 1, 1, 16, 8>}]} {
    %c0_i32 = arith.constant 0 : i32
    %0 = arith.cmpi eq, %arg3, %c0_i32 : i32
    %1 = arith.extui %0 : i1 to i32
    %c0_i32_0 = arith.constant 0 : i32
    %2 = arith.cmpi ne, %1, %c0_i32_0 : i32
    scf.if %2 {
      %cst_35 = arith.constant -1.000000e+30 : f32
      %48 = vector.broadcast %cst_35 : f32 to vector<16x1xf32>
      %c0_36 = arith.constant 0 : index
      %c0_37 = arith.constant 0 : index
      %49 = vector.load %arg8[%c0_36, %c0_37] : memref<16x1xf32, #tpu.memory_space<vmem>>, vector<16x1xf32>
      tpu.vector_store %arg8[%c0_36, %c0_37], %48 {strides = array<i32>} : memref<16x1xf32, #tpu.memory_space<vmem>>, vector<16x1xf32>,
      %cst_38 = arith.constant 0.000000e+00 : f32
      %50 = vector.broadcast %cst_38 : f32 to vector<16x1xf32>
      %c0_39 = arith.constant 0 : index
      %c0_40 = arith.constant 0 : index
      %51 = vector.load %arg9[%c0_39, %c0_40] : memref<16x1xf32, #tpu.memory_space<vmem>>, vector<16x1xf32>
      tpu.vector_store %arg9[%c0_39, %c0_40], %50 {strides = array<i32>} : memref<16x1xf32, #tpu.memory_space<vmem>>, vector<16x1xf32>,
      %cst_41 = arith.constant 0.000000e+00 : f32
      %52 = vector.broadcast %cst_41 : f32 to vector<16x8xf32>
      %c0_42 = arith.constant 0 : index
      %c0_43 = arith.constant 0 : index
      %53 = vector.load %arg10[%c0_42, %c0_43] : memref<16x8xf32, #tpu.memory_space<vmem>>, vector<16x8xf32>
      tpu.vector_store %arg10[%c0_42, %c0_43], %52 {strides = array<i32>} : memref<16x8xf32, #tpu.memory_space<vmem>>, vector<16x8xf32>,
    } else {
    }
    %c0 = arith.constant 0 : index
    %c0_1 = arith.constant 0 : index
    %c0_2 = arith.constant 0 : index
    %c0_3 = arith.constant 0 : index
    %c0_4 = arith.constant 0 : index
    %3 = vector.load %arg4[%c0, %c0_1, %c0_2, %c0_3, %c0_4] : memref<1x1x1x16x8xbf16, #tpu.memory_space<vmem>>, vector<1x1x1x16x8xbf16>
    %4 = vector.shape_cast %3 : vector<1x1x1x16x8xbf16> to vector<16x8xbf16>
    %c0_5 = arith.constant 0 : index
    %c0_6 = arith.constant 0 : index
    %c0_7 = arith.constant 0 : index
    %c0_8 = arith.constant 0 : index
    %c0_9 = arith.constant 0 : index
    %5 = vector.load %arg5[%c0_5, %c0_6, %c0_7, %c0_8, %c0_9] : memref<1x1x1x16x8xbf16, #tpu.memory_space<vmem>>, vector<1x1x1x16x8xbf16>
    %6 = vector.shape_cast %5 : vector<1x1x1x16x8xbf16> to vector<16x8xbf16>
    %c0_10 = arith.constant 0 : index
    %c0_11 = arith.constant 0 : index
    %c0_12 = arith.constant 0 : index
    %c0_13 = arith.constant 0 : index
    %c0_14 = arith.constant 0 : index
    %7 = vector.load %arg6[%c0_10, %c0_11, %c0_12, %c0_13, %c0_14] : memref<1x1x1x16x8xbf16, #tpu.memory_space<vmem>>, vector<1x1x1x16x8xbf16>
    %8 = vector.shape_cast %7 : vector<1x1x1x16x8xbf16> to vector<16x8xbf16>
    %cst = arith.constant dense<0.000000e+00> : vector<16x16xf32>
    %9 = tpu.matmul %4, %6, %cst {dimension_numbers = #tpu.dot_dimension_numbers<[1], [1], [0], [0], [0, 0, 1, 0], [], []>} : vector<16x8xbf16>, vector<16x8xbf16>, vector<16x16xf32> -> vector<16x16xf32>
    %cst_15 = arith.constant 0.353553385 : f32
    %10 = vector.broadcast %cst_15 : f32 to vector<16x16xf32>
    %11 = arith.mulf %9, %10 : vector<16x16xf32>
    %c16_i32 = arith.constant 16 : i32
    %12 = arith.muli %arg3, %c16_i32 : i32
    %13 = tpu.iota {dimensions = array<i32: 1>} : vector<16x16xi32>
    %14 = vector.broadcast %12 : i32 to vector<16x16xi32>
    %15 = arith.addi %14, %13 : vector<16x16xi32>
    %c5_i32 = arith.constant 5 : i32
    %16 = vector.broadcast %c5_i32 : i32 to vector<16x16xi32>
    %17 = arith.cmpi slt, %15, %16 : vector<16x16xi32>
    %cst_16 = arith.constant -1.000000e+30 : f32
    %18 = vector.broadcast %cst_16 : f32 to vector<16x16xf32>
    %19 = arith.select %17, %11, %18 : vector<16x16xi1>, vector<16x16xf32>
    %c0_17 = arith.constant 0 : index
    %c0_18 = arith.constant 0 : index
    %20 = vector.load %arg8[%c0_17, %c0_18] : memref<16x1xf32, #tpu.memory_space<vmem>>, vector<16x1xf32>
    %cst_19 = arith.constant dense<0xFF800000> : vector<16xf32>
    %21 = vector.multi_reduction <maximumf>, %19, %cst_19 [1] : vector<16x16xf32> to vector<16xf32>
    %22 = vector.shape_cast %21 : vector<16xf32> to vector<16x1xf32>
    %23 = arith.maximumf %20, %22 : vector<16x1xf32>
    %24 = arith.subf %20, %23 : vector<16x1xf32>
    %25 = math.exp %24 : vector<16x1xf32>
    %26 = vector.broadcast %23 : vector<16x1xf32> to vector<16x16xf32>
    %27 = arith.subf %19, %26 : vector<16x16xf32>
    %28 = math.exp %27 : vector<16x16xf32>
    %cst_20 = arith.constant 0.000000e+00 : f32
    %29 = vector.broadcast %cst_20 : f32 to vector<16x16xf32>
    %30 = arith.select %17, %28, %29 : vector<16x16xi1>, vector<16x16xf32>
    %c0_21 = arith.constant 0 : index
    %c0_22 = arith.constant 0 : index
    %31 = vector.load %arg9[%c0_21, %c0_22] : memref<16x1xf32, #tpu.memory_space<vmem>>, vector<16x1xf32>
    %32 = arith.mulf %25, %31 : vector<16x1xf32>
    %cst_23 = arith.constant dense<0.000000e+00> : vector<16xf32>
    %33 = vector.multi_reduction <add>, %30, %cst_23 [1] : vector<16x16xf32> to vector<16xf32>
    %34 = vector.shape_cast %33 : vector<16xf32> to vector<16x1xf32>
    %35 = arith.addf %32, %34 : vector<16x1xf32>
    %c0_24 = arith.constant 0 : index
    %c0_25 = arith.constant 0 : index
    %36 = vector.load %arg9[%c0_24, %c0_25] : memref<16x1xf32, #tpu.memory_space<vmem>>, vector<16x1xf32>
    tpu.vector_store %arg9[%c0_24, %c0_25], %35 {strides = array<i32>} : memref<16x1xf32, #tpu.memory_space<vmem>>, vector<16x1xf32>,
    %c0_26 = arith.constant 0 : index
    %c0_27 = arith.constant 0 : index
    %37 = vector.load %arg10[%c0_26, %c0_27] : memref<16x8xf32, #tpu.memory_space<vmem>>, vector<16x8xf32>
    %38 = vector.broadcast %25 : vector<16x1xf32> to vector<16x8xf32>
    %39 = arith.mulf %38, %37 : vector<16x8xf32>
    %40 = arith.truncf %30 : vector<16x16xf32> to vector<16x16xbf16>
    %cst_28 = arith.constant dense<0.000000e+00> : vector<16x8xf32>
    %41 = tpu.matmul %40, %8, %cst_28 {dimension_numbers = #tpu.dot_dimension_numbers<[1], [0], [0], [1], [0, 0, 1, 1], [], []>} : vector<16x16xbf16>, vector<16x8xbf16>, vector<16x8xf32> -> vector<16x8xf32>
    %42 = arith.addf %39, %41 : vector<16x8xf32>
    %c0_29 = arith.constant 0 : index
    %c0_30 = arith.constant 0 : index
    %43 = vector.load %arg10[%c0_29, %c0_30] : memref<16x8xf32, #tpu.memory_space<vmem>>, vector<16x8xf32>
    tpu.vector_store %arg10[%c0_29, %c0_30], %42 {strides = array<i32>} : memref<16x8xf32, #tpu.memory_space<vmem>>, vector<16x8xf32>,
    %c0_31 = arith.constant 0 : index
    %c0_32 = arith.constant 0 : index
    %44 = vector.load %arg8[%c0_31, %c0_32] : memref<16x1xf32, #tpu.memory_space<vmem>>, vector<16x1xf32>
    tpu.vector_store %arg8[%c0_31, %c0_32], %23 {strides = array<i32>} : memref<16x1xf32, #tpu.memory_space<vmem>>, vector<16x1xf32>,
    %c0_i32_33 = arith.constant 0 : i32
    %45 = arith.cmpi eq, %arg3, %c0_i32_33 : i32
    %46 = arith.extui %45 : i1 to i32
    %c0_i32_34 = arith.constant 0 : i32
    %47 = arith.cmpi ne, %46, %c0_i32_34 : i32
    scf.if %47 {
      %c0_35 = arith.constant 0 : index
      %c0_36 = arith.constant 0 : index
      %48 = vector.load %arg10[%c0_35, %c0_36] : memref<16x8xf32, #tpu.memory_space<vmem>>, vector<16x8xf32>
      %c0_37 = arith.constant 0 : index
      %c0_38 = arith.constant 0 : index
      %49 = vector.load %arg9[%c0_37, %c0_38] : memref<16x1xf32, #tpu.memory_space<vmem>>, vector<16x1xf32>
      %50 = tpu.reciprocal %49 {approx = true} : vector<16x1xf32> -> vector<16x1xf32>
      %51 = vector.broadcast %50 : vector<16x1xf32> to vector<16x8xf32>
      %52 = arith.mulf %48, %51 : vector<16x8xf32>
      %53 = arith.truncf %52 : vector<16x8xf32> to vector<16x8xbf16>
      %c0_39 = arith.constant 0 : index
      %c0_40 = arith.constant 0 : index
      %c0_41 = arith.constant 0 : index
      %c0_42 = arith.constant 0 : index
      %54 = vector.load %arg7[%c0_39, %c0_40, %c0_41, %c0_42] : memref<1x1x16x8xbf16, #tpu.memory_space<vmem>>, vector<1x1x16x8xbf16>
      %55 = vector.shape_cast %54 : vector<1x1x16x8xbf16> to vector<16x8xbf16>
      %56 = vector.shape_cast %53 : vector<16x8xbf16> to vector<1x1x16x8xbf16>
      tpu.vector_store %arg7[%c0_39, %c0_40, %c0_41, %c0_42], %56 {strides = array<i32>} : memref<1x1x16x8xbf16, #tpu.memory_space<vmem>>, vector<1x1x16x8xbf16>,
    } else {
    }
    return
  }
  func.func @transform_0(%arg0: i32, %arg1: i32, %arg2: i32, %arg3: i32) -> (i32, i32, i32, i32, i32) {
    %c0_i32 = arith.constant 0 : i32
    %c0_i32_0 = arith.constant 0 : i32
    %c0_i32_1 = arith.constant 0 : i32
    return %c0_i32, %arg0, %arg1, %arg2, %c0_i32_0 : i32, i32, i32, i32, i32
  }
  func.func @transform_1(%arg0: i32, %arg1: i32, %arg2: i32, %arg3: i32) -> (i32, i32, i32, i32, i32) {
    %c1_i32 = arith.constant 1 : i32
    %c0_i32 = arith.constant 0 : i32
    %c0_i32_0 = arith.constant 0 : i32
    return %c1_i32, %arg0, %arg1, %arg3, %c0_i32 : i32, i32, i32, i32, i32
  }
  func.func @transform_2(%arg0: i32, %arg1: i32, %arg2: i32, %arg3: i32) -> (i32, i32, i32, i32, i32) {
    %c2_i32 = arith.constant 2 : i32
    %c0_i32 = arith.constant 0 : i32
    %c0_i32_0 = arith.constant 0 : i32
    return %c2_i32, %arg0, %arg1, %arg3, %c0_i32 : i32, i32, i32, i32, i32
  }
  func.func @transform_3(%arg0: i32, %arg1: i32, %arg2: i32, %arg3: i32) -> (i32, i32, i32, i32) {
    %c0_i32 = arith.constant 0 : i32
    %c0_i32_0 = arith.constant 0 : i32
    return %arg0, %arg1, %arg2, %c0_i32 : i32, i32, i32, i32
  }
}

module attributes {stable_mosaic.version = 11 : i64} {
  func.func @_matmul_kernel(%arg0: i32, %arg1: i32, %arg2: i32, %arg3: memref<32x32xbf16, #tpu.memory_space<vmem>>, %arg4: memref<32x32xbf16, #tpu.memory_space<vmem>>, %arg5: memref<1x32xf32, #tpu.memory_space<vmem>>, %arg6: memref<32x32xbf16, #tpu.memory_space<vmem>>, %arg7: memref<32x32xbf16, #tpu.memory_space<vmem>>, %arg8: memref<32x32xf32, #tpu.memory_space<vmem>>) attributes {dimension_semantics = [#tpu.dimension_semantics<parallel>, #tpu.dimension_semantics<parallel>, #tpu.dimension_semantics<arbitrary>], iteration_bounds = array<i64: 1, 1, 1>, scalar_prefetch = 0 : i64, scratch_operands = 1 : i64, tpu.core_type = #tpu.core_type<tc>, window_params = [{transform_indices = @transform_0, window_bounds = array<i64: 32, 32>}, {transform_indices = @transform_1, window_bounds = array<i64: 32, 32>}, {transform_indices = @transform_2, window_bounds = array<i64: 1, 32>}, {transform_indices = @transform_3, window_bounds = array<i64: 32, 32>}, {transform_indices = @transform_4, window_bounds = array<i64: 32, 32>}]} {
    %c0_i32 = arith.constant 0 : i32
    %0 = arith.cmpi eq, %arg2, %c0_i32 : i32
    %1 = arith.extui %0 : i1 to i32
    %c0_i32_0 = arith.constant 0 : i32
    %2 = arith.cmpi ne, %1, %c0_i32_0 : i32
    scf.if %2 {
      %cst_10 = arith.constant 0.000000e+00 : f32
      %12 = vector.broadcast %cst_10 : f32 to vector<32x32xf32>
      %c0_11 = arith.constant 0 : index
      %c0_12 = arith.constant 0 : index
      %13 = vector.load %arg8[%c0_11, %c0_12] : memref<32x32xf32, #tpu.memory_space<vmem>>, vector<32x32xf32>
      tpu.vector_store %arg8[%c0_11, %c0_12], %12 {strides = array<i32>} : memref<32x32xf32, #tpu.memory_space<vmem>>, vector<32x32xf32>,
    } else {
    }
    %c0 = arith.constant 0 : index
    %c0_1 = arith.constant 0 : index
    %3 = vector.load %arg3[%c0, %c0_1] : memref<32x32xbf16, #tpu.memory_space<vmem>>, vector<32x32xbf16>
    %c0_2 = arith.constant 0 : index
    %c0_3 = arith.constant 0 : index
    %4 = vector.load %arg8[%c0_2, %c0_3] : memref<32x32xf32, #tpu.memory_space<vmem>>, vector<32x32xf32>
    %c0_4 = arith.constant 0 : index
    %c0_5 = arith.constant 0 : index
    %5 = vector.load %arg4[%c0_4, %c0_5] : memref<32x32xbf16, #tpu.memory_space<vmem>>, vector<32x32xbf16>
    %cst = arith.constant dense<0.000000e+00> : vector<32x32xf32>
    %6 = tpu.matmul %3, %5, %cst {dimension_numbers = #tpu.dot_dimension_numbers<[1], [0], [0], [1], [0, 0, 1, 1], [], []>} : vector<32x32xbf16>, vector<32x32xbf16>, vector<32x32xf32> -> vector<32x32xf32>
    %7 = arith.addf %4, %6 : vector<32x32xf32>
    %c0_6 = arith.constant 0 : index
    %c0_7 = arith.constant 0 : index
    %8 = vector.load %arg8[%c0_6, %c0_7] : memref<32x32xf32, #tpu.memory_space<vmem>>, vector<32x32xf32>
    tpu.vector_store %arg8[%c0_6, %c0_7], %7 {strides = array<i32>} : memref<32x32xf32, #tpu.memory_space<vmem>>, vector<32x32xf32>,
    %c0_i32_8 = arith.constant 0 : i32
    %9 = arith.cmpi eq, %arg2, %c0_i32_8 : i32
    %10 = arith.extui %9 : i1 to i32
    %c0_i32_9 = arith.constant 0 : i32
    %11 = arith.cmpi ne, %10, %c0_i32_9 : i32
    scf.if %11 {
      %c0_10 = arith.constant 0 : index
      %c0_11 = arith.constant 0 : index
      %12 = vector.load %arg8[%c0_10, %c0_11] : memref<32x32xf32, #tpu.memory_space<vmem>>, vector<32x32xf32>
      %c0_12 = arith.constant 0 : index
      %c0_13 = arith.constant 0 : index
      %13 = vector.load %arg5[%c0_12, %c0_13] : memref<1x32xf32, #tpu.memory_space<vmem>>, vector<1x32xf32>
      %14 = vector.broadcast %13 : vector<1x32xf32> to vector<32x32xf32>
      %15 = arith.addf %12, %14 : vector<32x32xf32>
      %c0_14 = arith.constant 0 : index
      %c0_15 = arith.constant 0 : index
      %16 = vector.load %arg6[%c0_14, %c0_15] : memref<32x32xbf16, #tpu.memory_space<vmem>>, vector<32x32xbf16>
      %17 = arith.extf %16 : vector<32x32xbf16> to vector<32x32xf32>
      %18 = arith.addf %15, %17 : vector<32x32xf32>
      %19 = arith.truncf %18 : vector<32x32xf32> to vector<32x32xbf16>
      %c0_16 = arith.constant 0 : index
      %c0_17 = arith.constant 0 : index
      %20 = vector.load %arg7[%c0_16, %c0_17] : memref<32x32xbf16, #tpu.memory_space<vmem>>, vector<32x32xbf16>
      tpu.vector_store %arg7[%c0_16, %c0_17], %19 {strides = array<i32>} : memref<32x32xbf16, #tpu.memory_space<vmem>>, vector<32x32xbf16>,
    } else {
    }
    return
  }
  func.func @transform_0(%arg0: i32, %arg1: i32, %arg2: i32) -> (i32, i32) {
    %c0_i32 = arith.constant 0 : i32
    return %arg0, %arg2 : i32, i32
  }
  func.func @transform_1(%arg0: i32, %arg1: i32, %arg2: i32) -> (i32, i32) {
    %c0_i32 = arith.constant 0 : i32
    return %arg2, %arg1 : i32, i32
  }
  func.func @transform_2(%arg0: i32, %arg1: i32, %arg2: i32) -> (i32, i32) {
    %c0_i32 = arith.constant 0 : i32
    %c0_i32_0 = arith.constant 0 : i32
    return %c0_i32, %arg1 : i32, i32
  }
  func.func @transform_3(%arg0: i32, %arg1: i32, %arg2: i32) -> (i32, i32) {
    %c0_i32 = arith.constant 0 : i32
    return %arg0, %arg1 : i32, i32
  }
  func.func @transform_4(%arg0: i32, %arg1: i32, %arg2: i32) -> (i32, i32) {
    %c0_i32 = arith.constant 0 : i32
    return %arg0, %arg1 : i32, i32
  }
}

module attributes {stable_mosaic.version = 11 : i64} {
  func.func @_matmul_kernel(%arg0: i32, %arg1: i32, %arg2: i32, %arg3: memref<32x32xbf16, #tpu.memory_space<vmem>>, %arg4: memref<1x32xf32, #tpu.memory_space<vmem>>, %arg5: memref<1x32xf32, #tpu.memory_space<vmem>>, %arg6: memref<32x64xbf16, #tpu.memory_space<vmem>>, %arg7: memref<1x64xf32, #tpu.memory_space<vmem>>, %arg8: memref<32x64xbf16, #tpu.memory_space<vmem>>, %arg9: memref<32x64xf32, #tpu.memory_space<vmem>>) attributes {dimension_semantics = [#tpu.dimension_semantics<parallel>, #tpu.dimension_semantics<parallel>, #tpu.dimension_semantics<arbitrary>], iteration_bounds = array<i64: 1, 1, 1>, scalar_prefetch = 0 : i64, scratch_operands = 1 : i64, tpu.core_type = #tpu.core_type<tc>, window_params = [{transform_indices = @transform_0, window_bounds = array<i64: 32, 32>}, {pipeline_mode = #tpu.pipeline_mode<synchronous>, transform_indices = @transform_1, window_bounds = array<i64: 1, 32>}, {pipeline_mode = #tpu.pipeline_mode<synchronous>, transform_indices = @transform_2, window_bounds = array<i64: 1, 32>}, {transform_indices = @transform_3, window_bounds = array<i64: 32, 64>}, {transform_indices = @transform_4, window_bounds = array<i64: 1, 64>}, {transform_indices = @transform_5, window_bounds = array<i64: 32, 64>}]} {
    %c0_i32 = arith.constant 0 : i32
    %0 = arith.cmpi eq, %arg2, %c0_i32 : i32
    %1 = arith.extui %0 : i1 to i32
    %c0_i32_0 = arith.constant 0 : i32
    %2 = arith.cmpi ne, %1, %c0_i32_0 : i32
    scf.if %2 {
      %cst_19 = arith.constant 0.000000e+00 : f32
      %36 = vector.broadcast %cst_19 : f32 to vector<32x64xf32>
      %c0_20 = arith.constant 0 : index
      %c0_21 = arith.constant 0 : index
      %37 = vector.load %arg9[%c0_20, %c0_21] : memref<32x64xf32, #tpu.memory_space<vmem>>, vector<32x64xf32>
      tpu.vector_store %arg9[%c0_20, %c0_21], %36 {strides = array<i32>} : memref<32x64xf32, #tpu.memory_space<vmem>>, vector<32x64xf32>,
    } else {
    }
    %c0 = arith.constant 0 : index
    %c0_1 = arith.constant 0 : index
    %3 = vector.load %arg3[%c0, %c0_1] : memref<32x32xbf16, #tpu.memory_space<vmem>>, vector<32x32xbf16>
    %4 = arith.extf %3 : vector<32x32xbf16> to vector<32x32xf32>
    %cst = arith.constant dense<0.000000e+00> : vector<32xf32>
    %5 = vector.multi_reduction <add>, %4, %cst [1] : vector<32x32xf32> to vector<32xf32>
    %6 = vector.shape_cast %5 : vector<32xf32> to vector<32x1xf32>
    %cst_2 = arith.constant 3.200000e+01 : f32
    %7 = vector.broadcast %cst_2 : f32 to vector<32x1xf32>
    %8 = arith.divf %6, %7 : vector<32x1xf32>
    %9 = vector.broadcast %8 : vector<32x1xf32> to vector<32x32xf32>
    %10 = arith.subf %4, %9 : vector<32x32xf32>
    %11 = arith.mulf %10, %10 : vector<32x32xf32>
    %cst_3 = arith.constant dense<0.000000e+00> : vector<32xf32>
    %12 = vector.multi_reduction <add>, %11, %cst_3 [1] : vector<32x32xf32> to vector<32xf32>
    %13 = vector.shape_cast %12 : vector<32xf32> to vector<32x1xf32>
    %cst_4 = arith.constant 3.200000e+01 : f32
    %14 = vector.broadcast %cst_4 : f32 to vector<32x1xf32>
    %15 = arith.divf %13, %14 : vector<32x1xf32>
    %cst_5 = arith.constant 9.99999974E-6 : f32
    %16 = vector.broadcast %cst_5 : f32 to vector<32x1xf32>
    %17 = arith.addf %15, %16 : vector<32x1xf32>
    %18 = math.rsqrt %17 : vector<32x1xf32>
    %19 = vector.broadcast %18 : vector<32x1xf32> to vector<32x32xf32>
    %20 = arith.mulf %10, %19 : vector<32x32xf32>
    %c0_6 = arith.constant 0 : index
    %c0_7 = arith.constant 0 : index
    %21 = vector.load %arg4[%c0_6, %c0_7] : memref<1x32xf32, #tpu.memory_space<vmem>>, vector<1x32xf32>
    %22 = vector.broadcast %21 : vector<1x32xf32> to vector<32x32xf32>
    %23 = arith.mulf %20, %22 : vector<32x32xf32>
    %c0_8 = arith.constant 0 : index
    %c0_9 = arith.constant 0 : index
    %24 = vector.load %arg5[%c0_8, %c0_9] : memref<1x32xf32, #tpu.memory_space<vmem>>, vector<1x32xf32>
    %25 = vector.broadcast %24 : vector<1x32xf32> to vector<32x32xf32>
    %26 = arith.addf %23, %25 : vector<32x32xf32>
    %27 = arith.truncf %26 : vector<32x32xf32> to vector<32x32xbf16>
    %c0_10 = arith.constant 0 : index
    %c0_11 = arith.constant 0 : index
    %28 = vector.load %arg9[%c0_10, %c0_11] : memref<32x64xf32, #tpu.memory_space<vmem>>, vector<32x64xf32>
    %c0_12 = arith.constant 0 : index
    %c0_13 = arith.constant 0 : index
    %29 = vector.load %arg6[%c0_12, %c0_13] : memref<32x64xbf16, #tpu.memory_space<vmem>>, vector<32x64xbf16>
    %cst_14 = arith.constant dense<0.000000e+00> : vector<32x64xf32>
    %30 = tpu.matmul %27, %29, %cst_14 {dimension_numbers = #tpu.dot_dimension_numbers<[1], [0], [0], [1], [0, 0, 1, 1], [], []>} : vector<32x32xbf16>, vector<32x64xbf16>, vector<32x64xf32> -> vector<32x64xf32>
    %31 = arith.addf %28, %30 : vector<32x64xf32>
    %c0_15 = arith.constant 0 : index
    %c0_16 = arith.constant 0 : index
    %32 = vector.load %arg9[%c0_15, %c0_16] : memref<32x64xf32, #tpu.memory_space<vmem>>, vector<32x64xf32>
    tpu.vector_store %arg9[%c0_15, %c0_16], %31 {strides = array<i32>} : memref<32x64xf32, #tpu.memory_space<vmem>>, vector<32x64xf32>,
    %c0_i32_17 = arith.constant 0 : i32
    %33 = arith.cmpi eq, %arg2, %c0_i32_17 : i32
    %34 = arith.extui %33 : i1 to i32
    %c0_i32_18 = arith.constant 0 : i32
    %35 = arith.cmpi ne, %34, %c0_i32_18 : i32
    scf.if %35 {
      %c0_19 = arith.constant 0 : index
      %c0_20 = arith.constant 0 : index
      %36 = vector.load %arg9[%c0_19, %c0_20] : memref<32x64xf32, #tpu.memory_space<vmem>>, vector<32x64xf32>
      %c0_21 = arith.constant 0 : index
      %c0_22 = arith.constant 0 : index
      %37 = vector.load %arg7[%c0_21, %c0_22] : memref<1x64xf32, #tpu.memory_space<vmem>>, vector<1x64xf32>
      %38 = vector.broadcast %37 : vector<1x64xf32> to vector<32x64xf32>
      %39 = arith.addf %36, %38 : vector<32x64xf32>
      %cst_23 = arith.constant 5.000000e-01 : f32
      %40 = vector.broadcast %cst_23 : f32 to vector<32x64xf32>
      %41 = arith.mulf %40, %39 : vector<32x64xf32>
      %cst_24 = arith.constant 0.707106769 : f32
      %42 = vector.broadcast %cst_24 : f32 to vector<32x64xf32>
      %43 = arith.mulf %39, %42 : vector<32x64xf32>
      %cst_25 = arith.constant 0.000000e+00 : f32
      %44 = vector.broadcast %cst_25 : f32 to vector<32x64xf32>
      %45 = arith.cmpf oge, %43, %44 : vector<32x64xf32>
      %cst_26 = arith.constant 1.000000e+00 : f32
      %cst_27 = arith.constant -1.000000e+00 : f32
      %46 = vector.broadcast %cst_26 : f32 to vector<32x64xf32>
      %47 = vector.broadcast %cst_27 : f32 to vector<32x64xf32>
      %48 = arith.select %45, %46, %47 : vector<32x64xi1>, vector<32x64xf32>
      %49 = math.absf %43 : vector<32x64xf32>
      %cst_28 = arith.constant 0.327591091 : f32
      %50 = vector.broadcast %cst_28 : f32 to vector<32x64xf32>
      %51 = arith.mulf %50, %49 : vector<32x64xf32>
      %cst_29 = arith.constant 1.000000e+00 : f32
      %52 = vector.broadcast %cst_29 : f32 to vector<32x64xf32>
      %53 = arith.addf %52, %51 : vector<32x64xf32>
      %cst_30 = arith.constant 1.000000e+00 : f32
      %54 = vector.broadcast %cst_30 : f32 to vector<32x64xf32>
      %55 = arith.divf %54, %53 : vector<32x64xf32>
      %cst_31 = arith.constant 1.06140542 : f32
      %56 = vector.broadcast %cst_31 : f32 to vector<32x64xf32>
      %57 = arith.mulf %56, %55 : vector<32x64xf32>
      %cst_32 = arith.constant -1.45315206 : f32
      %58 = vector.broadcast %cst_32 : f32 to vector<32x64xf32>
      %59 = arith.addf %57, %58 : vector<32x64xf32>
      %60 = arith.mulf %59, %55 : vector<32x64xf32>
      %cst_33 = arith.constant 1.42141378 : f32
      %61 = vector.broadcast %cst_33 : f32 to vector<32x64xf32>
      %62 = arith.addf %60, %61 : vector<32x64xf32>
      %63 = arith.mulf %62, %55 : vector<32x64xf32>
      %cst_34 = arith.constant -0.284496725 : f32
      %64 = vector.broadcast %cst_34 : f32 to vector<32x64xf32>
      %65 = arith.addf %63, %64 : vector<32x64xf32>
      %66 = arith.mulf %65, %55 : vector<32x64xf32>
      %cst_35 = arith.constant 0.254829586 : f32
      %67 = vector.broadcast %cst_35 : f32 to vector<32x64xf32>
      %68 = arith.addf %66, %67 : vector<32x64xf32>
      %69 = arith.mulf %68, %55 : vector<32x64xf32>
      %cst_36 = arith.constant 0.000000e+00 : f32
      %70 = vector.broadcast %cst_36 : f32 to vector<32x64xf32>
      %71 = arith.subf %70, %49 : vector<32x64xf32>
      %72 = arith.mulf %71, %49 : vector<32x64xf32>
      %73 = math.exp %72 : vector<32x64xf32>
      %74 = arith.mulf %69, %73 : vector<32x64xf32>
      %cst_37 = arith.constant 1.000000e+00 : f32
      %75 = vector.broadcast %cst_37 : f32 to vector<32x64xf32>
      %76 = arith.subf %75, %74 : vector<32x64xf32>
      %77 = arith.mulf %48, %76 : vector<32x64xf32>
      %cst_38 = arith.constant 1.000000e+00 : f32
      %78 = vector.broadcast %cst_38 : f32 to vector<32x64xf32>
      %79 = arith.addf %78, %77 : vector<32x64xf32>
      %80 = arith.mulf %41, %79 : vector<32x64xf32>
      %81 = arith.truncf %80 : vector<32x64xf32> to vector<32x64xbf16>
      %c0_39 = arith.constant 0 : index
      %c0_40 = arith.constant 0 : index
      %82 = vector.load %arg8[%c0_39, %c0_40] : memref<32x64xbf16, #tpu.memory_space<vmem>>, vector<32x64xbf16>
      tpu.vector_store %arg8[%c0_39, %c0_40], %81 {strides = array<i32>} : memref<32x64xbf16, #tpu.memory_space<vmem>>, vector<32x64xbf16>,
    } else {
    }
    return
  }
  func.func @transform_0(%arg0: i32, %arg1: i32, %arg2: i32) -> (i32, i32) {
    %c0_i32 = arith.constant 0 : i32
    return %arg0, %arg2 : i32, i32
  }
  func.func @transform_1(%arg0: i32, %arg1: i32, %arg2: i32) -> (i32, i32) {
    %c0_i32 = arith.constant 0 : i32
    %c0_i32_0 = arith.constant 0 : i32
    %c0_i32_1 = arith.constant 0 : i32
    return %c0_i32, %c0_i32_0 : i32, i32
  }
  func.func @transform_2(%arg0: i32, %arg1: i32, %arg2: i32) -> (i32, i32) {
    %c0_i32 = arith.constant 0 : i32
    %c0_i32_0 = arith.constant 0 : i32
    %c0_i32_1 = arith.constant 0 : i32
    return %c0_i32, %c0_i32_0 : i32, i32
  }
  func.func @transform_3(%arg0: i32, %arg1: i32, %arg2: i32) -> (i32, i32) {
    %c0_i32 = arith.constant 0 : i32
    return %arg2, %arg1 : i32, i32
  }
  func.func @transform_4(%arg0: i32, %arg1: i32, %arg2: i32) -> (i32, i32) {
    %c0_i32 = arith.constant 0 : i32
    %c0_i32_0 = arith.constant 0 : i32
    return %c0_i32, %arg1 : i32, i32
  }
  func.func @transform_5(%arg0: i32, %arg1: i32, %arg2: i32) -> (i32, i32) {
    %c0_i32 = arith.constant 0 : i32
    return %arg0, %arg1 : i32, i32
  }
}

module attributes {stable_mosaic.version = 11 : i64} {
  func.func @_matmul_kernel(%arg0: i32, %arg1: i32, %arg2: i32, %arg3: memref<32x64xbf16, #tpu.memory_space<vmem>>, %arg4: memref<64x32xbf16, #tpu.memory_space<vmem>>, %arg5: memref<1x32xf32, #tpu.memory_space<vmem>>, %arg6: memref<32x32xbf16, #tpu.memory_space<vmem>>, %arg7: memref<32x32xbf16, #tpu.memory_space<vmem>>, %arg8: memref<32x32xf32, #tpu.memory_space<vmem>>) attributes {dimension_semantics = [#tpu.dimension_semantics<parallel>, #tpu.dimension_semantics<parallel>, #tpu.dimension_semantics<arbitrary>], iteration_bounds = array<i64: 1, 1, 1>, scalar_prefetch = 0 : i64, scratch_operands = 1 : i64, tpu.core_type = #tpu.core_type<tc>, window_params = [{transform_indices = @transform_0, window_bounds = array<i64: 32, 64>}, {transform_indices = @transform_1, window_bounds = array<i64: 64, 32>}, {transform_indices = @transform_2, window_bounds = array<i64: 1, 32>}, {transform_indices = @transform_3, window_bounds = array<i64: 32, 32>}, {transform_indices = @transform_4, window_bounds = array<i64: 32, 32>}]} {
    %c0_i32 = arith.constant 0 : i32
    %0 = arith.cmpi eq, %arg2, %c0_i32 : i32
    %1 = arith.extui %0 : i1 to i32
    %c0_i32_0 = arith.constant 0 : i32
    %2 = arith.cmpi ne, %1, %c0_i32_0 : i32
    scf.if %2 {
      %cst_10 = arith.constant 0.000000e+00 : f32
      %12 = vector.broadcast %cst_10 : f32 to vector<32x32xf32>
      %c0_11 = arith.constant 0 : index
      %c0_12 = arith.constant 0 : index
      %13 = vector.load %arg8[%c0_11, %c0_12] : memref<32x32xf32, #tpu.memory_space<vmem>>, vector<32x32xf32>
      tpu.vector_store %arg8[%c0_11, %c0_12], %12 {strides = array<i32>} : memref<32x32xf32, #tpu.memory_space<vmem>>, vector<32x32xf32>,
    } else {
    }
    %c0 = arith.constant 0 : index
    %c0_1 = arith.constant 0 : index
    %3 = vector.load %arg3[%c0, %c0_1] : memref<32x64xbf16, #tpu.memory_space<vmem>>, vector<32x64xbf16>
    %c0_2 = arith.constant 0 : index
    %c0_3 = arith.constant 0 : index
    %4 = vector.load %arg8[%c0_2, %c0_3] : memref<32x32xf32, #tpu.memory_space<vmem>>, vector<32x32xf32>
    %c0_4 = arith.constant 0 : index
    %c0_5 = arith.constant 0 : index
    %5 = vector.load %arg4[%c0_4, %c0_5] : memref<64x32xbf16, #tpu.memory_space<vmem>>, vector<64x32xbf16>
    %cst = arith.constant dense<0.000000e+00> : vector<32x32xf32>
    %6 = tpu.matmul %3, %5, %cst {dimension_numbers = #tpu.dot_dimension_numbers<[1], [0], [0], [1], [0, 0, 1, 1], [], []>} : vector<32x64xbf16>, vector<64x32xbf16>, vector<32x32xf32> -> vector<32x32xf32>
    %7 = arith.addf %4, %6 : vector<32x32xf32>
    %c0_6 = arith.constant 0 : index
    %c0_7 = arith.constant 0 : index
    %8 = vector.load %arg8[%c0_6, %c0_7] : memref<32x32xf32, #tpu.memory_space<vmem>>, vector<32x32xf32>
    tpu.vector_store %arg8[%c0_6, %c0_7], %7 {strides = array<i32>} : memref<32x32xf32, #tpu.memory_space<vmem>>, vector<32x32xf32>,
    %c0_i32_8 = arith.constant 0 : i32
    %9 = arith.cmpi eq, %arg2, %c0_i32_8 : i32
    %10 = arith.extui %9 : i1 to i32
    %c0_i32_9 = arith.constant 0 : i32
    %11 = arith.cmpi ne, %10, %c0_i32_9 : i32
    scf.if %11 {
      %c0_10 = arith.constant 0 : index
      %c0_11 = arith.constant 0 : index
      %12 = vector.load %arg8[%c0_10, %c0_11] : memref<32x32xf32, #tpu.memory_space<vmem>>, vector<32x32xf32>
      %c0_12 = arith.constant 0 : index
      %c0_13 = arith.constant 0 : index
      %13 = vector.load %arg5[%c0_12, %c0_13] : memref<1x32xf32, #tpu.memory_space<vmem>>, vector<1x32xf32>
      %14 = vector.broadcast %13 : vector<1x32xf32> to vector<32x32xf32>
      %15 = arith.addf %12, %14 : vector<32x32xf32>
      %c0_14 = arith.constant 0 : index
      %c0_15 = arith.constant 0 : index
      %16 = vector.load %arg6[%c0_14, %c0_15] : memref<32x32xbf16, #tpu.memory_space<vmem>>, vector<32x32xbf16>
      %17 = arith.extf %16 : vector<32x32xbf16> to vector<32x32xf32>
      %18 = arith.addf %15, %17 : vector<32x32xf32>
      %19 = arith.truncf %18 : vector<32x32xf32> to vector<32x32xbf16>
      %c0_16 = arith.constant 0 : index
      %c0_17 = arith.constant 0 : index
      %20 = vector.load %arg7[%c0_16, %c0_17] : memref<32x32xbf16, #tpu.memory_space<vmem>>, vector<32x32xbf16>
      tpu.vector_store %arg7[%c0_16, %c0_17], %19 {strides = array<i32>} : memref<32x32xbf16, #tpu.memory_space<vmem>>, vector<32x32xbf16>,
    } else {
    }
    return
  }
  func.func @transform_0(%arg0: i32, %arg1: i32, %arg2: i32) -> (i32, i32) {
    %c0_i32 = arith.constant 0 : i32
    return %arg0, %arg2 : i32, i32
  }
  func.func @transform_1(%arg0: i32, %arg1: i32, %arg2: i32) -> (i32, i32) {
    %c0_i32 = arith.constant 0 : i32
    return %arg2, %arg1 : i32, i32
  }
  func.func @transform_2(%arg0: i32, %arg1: i32, %arg2: i32) -> (i32, i32) {
    %c0_i32 = arith.constant 0 : i32
    %c0_i32_0 = arith.constant 0 : i32
    return %c0_i32, %arg1 : i32, i32
  }
  func.func @transform_3(%arg0: i32, %arg1: i32, %arg2: i32) -> (i32, i32) {
    %c0_i32 = arith.constant 0 : i32
    return %arg0, %arg1 : i32, i32
  }
  func.func @transform_4(%arg0: i32, %arg1: i32, %arg2: i32) -> (i32, i32) {
    %c0_i32 = arith.constant 0 : i32
    return %arg0, %arg1 : i32, i32
  }
}

</mosaic_0001>

<bundles_post_ra>
// kernel: siglip_vision_forward.13
= control target key start
LH: loop header
LB: loop body
LE: loop exit
PB: predicated region body
PF: predicated region fallthrough
CT: control target
= control target key end

     0   :  { %vm19_vm0 = vcmask 261120   ;;  %v223_v0 = vmov 0   ;;  %v224_v2 = vmov 0.0   ;;  %vm125_vm1 = vcmask 523264   ;;  %s292_s1 = inlined_call_operand.vmem [shape: bf16[192,32], index: 1, kind: input, shape index: {}]   ;;  %s293_s0 = inlined_call_operand.vmem [shape: bf16[8,192], index: 0, kind: input, shape index: {}]   ;;  %s294_s2 = inlined_call_operand.vmem [shape: f32[1,32], index: 2, kind: input, shape index: {}]   ;;  %s295_s3 = inlined_call_operand.vmem [shape: bf16[8,32], index: 3, kind: output, shape index: {}]  }
   0x1   :  { %129 = vmatprep.subr.bf16.mxu0 %v223_v0  ;;  %v209_v1 = vld [vmem:[%s292_s1] sm:$0xff]   ;;  %20 = vst.msk [vmem:[#allocation2] sm:$0xff] %vm19_vm0, %v224_v2  ;;  %v210_v3 = vld [vmem:[%s292_s1 + $0x8] sm:$0xff]   ;;  %v211_v4 = vld [vmem:[%s292_s1 + $0x10] sm:$0xff]   ;;  %vm185_vm2 = vcmask 257024  }
   0x2   :  { %130 = vmatpush1.bf16.msra.mxu0 %v209_v1  ;;  %v212_v5 = vld [vmem:[%s292_s1 + $0x18] sm:$0xff]   ;;  %v21_v6 = vld [vmem:[%s293_s0] sm:$0xff]  ;;  %v214_v9 = vld [vmem:[%s292_s1 + $0x28] sm:$0xff]  }
   0x3   :  { %131 = vmatprep.subr.bf16.mxu0 %v223_v0  ;;  %v192_v7 = vcombine.high %v21_v6, %v21_v6  ;;  %v213_v8 = vld [vmem:[%s292_s1 + $0x20] sm:$0xff]   ;;  %v215_v10 = vld [vmem:[%s292_s1 + $0x30] sm:$0xff]   ;;  %v216_v11 = vld [vmem:[%s292_s1 + $0x38] sm:$0xff]   ;;  %v191_v16 = vcombine.low %v21_v6, %v21_v6 }
   0x4   :  { %v217_v12 = vld [vmem:[%s292_s1 + $0x40] sm:$0xff]   ;;  %v218_v13 = vld [vmem:[%s292_s1 + $0x48] sm:$0xff]   ;;  %v219_v14 = vld [vmem:[%s292_s1 + $0x50] sm:$0xff]  }
   0x5   :  { %205 = vmatprep.mubr.msk.bf16.mxu0 %vm125_vm1, %v192_v7  ;;  %v220_v15 = vld [vmem:[%s292_s1 + $0x58] sm:$0xff]   ;;  %v206_v23 = vld [vmem:[%s294_s2] ss:$0 sm:$0xff] }
   0x6   :  { %132 = vmatpush1.bf16.msra.mxu0 %v210_v3 }
   0x7   :  { %133 = vmatprep.subr.bf16.mxu0 %v223_v0 }
   0x8   :  { %v22_v17 = vld [vmem:[#allocation2] sm:$0xff] }
   0xa   :  { %134 = vmatpush1.bf16.msra.mxu0 %v211_v4 }
   0xb   :  { %135 = vmatprep.subr.bf16.mxu0 %v223_v0 }
   0xe   :  { %136 = vmatpush1.bf16.msra.mxu0 %v212_v5 }
   0xf   :  { %137 = vmatprep.subr.bf16.mxu0 %v223_v0 }
  0x12   :  { %138 = vmatpush1.bf16.msra.mxu0 %v213_v8 }
  0x13   :  { %139 = vmatprep.subr.bf16.mxu0 %v223_v0 }
  0x16   :  { %140 = vmatpush1.bf16.msra.mxu0 %v214_v9 }
  0x17   :  { %141 = vmatprep.subr.bf16.mxu0 %v223_v0 }
  0x1a   :  { %142 = vmatpush1.bf16.msra.mxu0 %v215_v10 }
  0x1b   :  { %143 = vmatprep.subr.bf16.mxu0 %v223_v0 }
  0x1e   :  { %144 = vmatpush1.bf16.msra.mxu0 %v216_v11 }
  0x1f   :  { %145 = vmatprep.subr.bf16.mxu0 %v223_v0 }
  0x22   :  { %146 = vmatpush1.bf16.msra.mxu0 %v217_v12 }
  0x23   :  { %147 = vmatprep.subr.bf16.mxu0 %v223_v0 }
  0x26   :  { %148 = vmatpush1.bf16.msra.mxu0 %v218_v13 }
  0x27   :  { %149 = vmatprep.subr.bf16.mxu0 %v223_v0 }
  0x2a   :  { %150 = vmatpush1.bf16.msra.mxu0 %v219_v14 }
  0x2b   :  { %151 = vmatprep.subr.bf16.mxu0 %v223_v0 }
  0x2e   :  { %152 = vmatpush1.bf16.msra.mxu0 %v220_v15 }
  0x31   :  { %162 = vmatmul.mubr.bf16.vlgmr.msra.gmra.mrb[0].mxu0 %v191_v16 }
 0x104   :  { %v163_v18 = vpop.f32.mrb[0].mxu0 }
 0x105   :  { %v169_v19 = vadd.f32 %v163_v18, %v22_v17  ;;  %v165_v20 = vpop.f32.mrb[1].mxu0 }
 0x106   :  { %v166_v21 = vpop.f32.mrb[2].mxu0 }
 0x107   :  { %171 = vst.msk [vmem:[#allocation2] sm:$0xff] %vm19_vm0, %v169_v19  ;;  %v167_v22 = vpop.f32.mrb[3].mxu0 }
 0x10e   :  { %v175_v24 = vld [vmem:[#allocation2] sm:$0xff] }
 0x10f   :  { %v183_v25 = vadd.f32 %v206_v23, %v175_v24 }
 0x111   :  { %v184_v26 = vpack.c.bf16 %v183_v25, %v183_v25 }
 0x113   :  { %186 = vst.msk [vmem:[%s295_s3] sm:$0xf] %vm185_vm2, %v184_v26 }

// kernel: siglip_vision_forward.15
= control target key start
LH: loop header
LB: loop body
LE: loop exit
PB: predicated region body
PF: predicated region fallthrough
CT: control target
= control target key end

     0   :  { %vm38_vm0 = vcmask 261120   ;;  %vm25_vm1 = vcmask 785408   ;;  %v290_v32 = vmov 0.0   ;;  %vm234_vm2 = vcmask 781312   ;;  %s372_s0 = inlined_call_operand.vmem [shape: bf16[32,32], index: 0, kind: input, shape index: {}]   ;;  %s373_s3 = inlined_call_operand.vmem [shape: bf16[32,96], index: 3, kind: input, shape index: {}]   ;;  %s374_s1 = inlined_call_operand.vmem [shape: f32[1,32], index: 1, kind: input, shape index: {}]   ;;  %s375_s2 = inlined_call_operand.vmem [shape: f32[1,32], index: 2, kind: input, shape index: {}]   ;;  %s376_s4 = inlined_call_operand.vmem [shape: f32[1,96], index: 4, kind: input, shape index: {}]   ;;  %s377_s5 = inlined_call_operand.vmem [shape: bf16[32,96], index: 5, kind: output, shape index: {}]  }
   0x1   :  { %v259_v0 = vld [vmem:[%s372_s0] sm:$0xff]   ;;  %v266_v1 = vld [vmem:[%s372_s0 + $0x8] sm:$0xff]   ;;  %28 = vst.msk [vmem:[#allocation2 + $0x10] sm:$0xff] %vm25_vm1, %v290_v32  ;;  %26 = vst.msk [vmem:[#allocation2] sm:$0xff] %vm25_vm1, %v290_v32 }
   0x2   :  { %v260_v2 = vunpack.c.l.bf16 %v259_v0  ;;  %v264_v3 = vunpack.c.l.bf16 %v266_v1  ;;  %v261_v4 = vunpack.c.h.bf16 %v259_v0  ;;  %v265_v5 = vunpack.c.h.bf16 %v266_v1  ;;  %v280_v30 = vld [vmem:[%s373_s3] sm:$0xff]   ;;  %v281_v31 = vld [vmem:[%s373_s3 + $0x8] sm:$0xff]   ;;  %27 = vst.msk [vmem:[#allocation2 + $0x8] sm:$0xff] %vm25_vm1, %v290_v32  ;;  %29 = vst.msk [vmem:[#allocation2 + $0x18] sm:$0xff] %vm25_vm1, %v290_v32 }
   0x3   :  { %271 = vmatprep.subr.bf16.mxu0 %v280_v30  ;;  %v243_v47 = vld [vmem:[%s374_s1] ss:$0 sm:$0xff] }
   0x4   :  { %v39_v6 = vsel %vm38_vm0, %v260_v2, 0.0  ;;  %v45_v7 = vsel %vm38_vm0, %v264_v3, 0.0  ;;  %v42_v8 = vsel %vm38_vm0, %v261_v4, 0.0  ;;  %v48_v9 = vsel %vm38_vm0, %v265_v5, 0.0  ;;  %272 = vmatpush3.bf16.msra.mxu0 %v280_v30  ;;  %v244_v53 = vld [vmem:[%s375_s2] ss:$0 sm:$0xff] }
   0x5   :  { %40 = vadd.xlane.f32.xlu0 %v39_v6  ;;  %46 = vadd.xlane.f32.xlu1 %v45_v7 }
   0x6   :  { %273 = vmatprep.subr.bf16.mxu0 %v281_v31 }
   0x8   :  { %274 = vmatpush3.bf16.msra.mxu0 %v281_v31  ;;  %v118_v1 = vld [vmem:[#allocation2 + $0x10] sm:$0xff] }
   0x9   :  { %43 = vadd.xlane.f32.xlu0 %v42_v8  ;;  %49 = vadd.xlane.f32.xlu1 %v48_v9  ;;  %v117_v7 = vld [vmem:[#allocation2 + $0x8] sm:$0xff] }
  0x92   :  { %v41_v10 = vpop.xlane.xlu0 %40  ;;  %v47_v11 = vpop.xlane.xlu1 %46 }
  0x93   :  { %v52_v12 = vmul.f32 0.03125, %v41_v10  ;;  %v54_v13 = vmul.f32 0.03125, %v47_v11 }
  0x95   :  { %v56_v14 = vsub.f32 %v260_v2, %v52_v12  ;;  %v58_v15 = vsub.f32 %v264_v3, %v54_v13  ;;  %v116_v2 = vld [vmem:[#allocation2] sm:$0xff] }
  0x96   :  { %v44_v16 = vpop.xlane.xlu0 %43  ;;  %v50_v17 = vpop.xlane.xlu1 %49  ;;  %v249_v13 = vld [vmem:[%s376_s4] ss:$0 sm:$0xff] }
  0x97   :  { %v53_v18 = vmul.f32 0.03125, %v44_v16  ;;  %v55_v19 = vmul.f32 0.03125, %v50_v17  ;;  %v60_v20 = vmul.f32 %v56_v14, %v56_v14  ;;  %v62_v21 = vmul.f32 %v58_v15, %v58_v15 }
  0x99   :  { %v57_v22 = vsub.f32 %v261_v4, %v53_v18  ;;  %v59_v23 = vsub.f32 %v265_v5, %v55_v19  ;;  %v64_v24 = vsel %vm38_vm0, %v60_v20, 0.0  ;;  %v70_v25 = vsel %vm38_vm0, %v62_v21, 0.0  ;;  %v119_v4 = vld [vmem:[#allocation2 + $0x18] sm:$0xff] }
  0x9a   :  { %65 = vadd.xlane.f32.xlu0 %v64_v24 }
  0x9b   :  { %v61_v26 = vmul.f32 %v57_v22, %v57_v22  ;;  %v63_v27 = vmul.f32 %v59_v23, %v59_v23 }
  0x9d   :  { %v67_v28 = vsel %vm38_vm0, %v61_v26, 0.0  ;;  %v73_v29 = vsel %vm38_vm0, %v63_v27, 0.0 }
  0x9e   :  { %71 = vadd.xlane.f32.xlu0 %v70_v25  ;;  %68 = vadd.xlane.f32.xlu1 %v67_v28 }
  0xa2   :  { %74 = vadd.xlane.f32.xlu1 %v73_v29 }
 0x127   :  { %v66_v33 = vpop.xlane.xlu0 %65 }
 0x128   :  { %v76_v34 = vmul.f32 0.03125, %v66_v33 }
 0x12a   :  { %v80_v35 = vadd.f32 1e-05, %v76_v34 }
 0x12b   :  { %v69_v36 = vpop.xlane.xlu1 %68  ;;  %v72_v37 = vpop.xlane.xlu0 %71 }
 0x12c   :  { %282 = vrsqrt.f32 %v80_v35  ;;  %v77_v38 = vmul.f32 0.03125, %v69_v36  ;;  %v78_v39 = vmul.f32 0.03125, %v72_v37 }
 0x12e   :  { %v81_v40 = vadd.f32 1e-05, %v77_v38  ;;  %v82_v41 = vadd.f32 1e-05, %v78_v39 }
 0x12f   :  { %v75_v42 = vpop.xlane.xlu1 %74 }
 0x130   :  { %284 = vrsqrt.f32 %v81_v40  ;;  %v79_v43 = vmul.f32 0.03125, %v75_v42 }
 0x131   :  { %286 = vrsqrt.f32 %v82_v41 }
 0x132   :  { %v83_v44 = vadd.f32 1e-05, %v79_v43 }
 0x134   :  { %288 = vrsqrt.f32 %v83_v44 }
 0x136   :  { %v283_v45 = vpop.eup %282 }
 0x137   :  { %v88_v46 = vmul.f32 %v283_v45, %v56_v14 }
 0x139   :  { %v99_v51 = vmul.f32 %v243_v47, %v88_v46 }
 0x13a   :  { %v285_v48 = vpop.eup %284 }
 0x13b   :  { %v287_v49 = vpop.eup %286  ;;  %v89_v50 = vmul.f32 %v285_v48, %v57_v22  ;;  %v110_v57 = vadd.f32 %v244_v53, %v99_v51 }
 0x13c   :  { %v90_v52 = vmul.f32 %v287_v49, %v58_v15 }
 0x13d   :  { %v100_v54 = vmul.f32 %v243_v47, %v89_v50 }
 0x13e   :  { %v289_v55 = vpop.eup %288  ;;  %v101_v59 = vmul.f32 %v243_v47, %v90_v52 }
 0x13f   :  { %v91_v56 = vmul.f32 %v289_v55, %v59_v23  ;;  %v111_v58 = vadd.f32 %v244_v53, %v100_v54 }
 0x140   :  { %v112_v62 = vadd.f32 %v244_v53, %v101_v59 }
 0x141   :  { %v114_v60 = vpack.c.bf16 %v111_v58, %v110_v57  ;;  %v102_v61 = vmul.f32 %v243_v47, %v91_v56 }
 0x143   :  { %275 = vmatprep.mubr.msk.bf16.mxu0 %vm38_vm0, %v114_v60  ;;  %v113_v63 = vadd.f32 %v244_v53, %v102_v61 }
 0x145   :  { %v115_v0 = vpack.c.bf16 %v113_v63, %v112_v62 }
 0x147   :  { %276 = vmatmul.mubr.msk.bf16.vlgmr.msra.gmra.mrb[0].mxu0 %vm38_vm0, %v115_v0 }
 0x21a   :  { %v277_v3 = vpop.f32.mrb[0].mxu0 }
 0x21b   :  { %v193_v5 = vadd.f32 %v277_v3, %v118_v1  ;;  %v176_v6 = vpop.f32.mrb[1].mxu0 }
 0x21c   :  { %v191_v8 = vadd.f32 %v176_v6, %v116_v2  ;;  %v278_v9 = vpop.f32.mrb[2].mxu0 }
 0x21d   :  { %198 = vst.msk [vmem:[#allocation2 + $0x10] sm:$0xff] %vm25_vm1, %v193_v5  ;;  %v194_v10 = vadd.f32 %v278_v9, %v119_v4  ;;  %v179_v11 = vpop.f32.mrb[3].mxu0 }
 0x21e   :  { %196 = vst.msk [vmem:[#allocation2] sm:$0xff] %vm25_vm1, %v191_v8  ;;  %v192_v12 = vadd.f32 %v179_v11, %v117_v7 }
 0x21f   :  { %199 = vst.msk [vmem:[#allocation2 + $0x18] sm:$0xff] %vm25_vm1, %v194_v10 }
 0x220   :  { %197 = vst.msk [vmem:[#allocation2 + $0x8] sm:$0xff] %vm25_vm1, %v192_v12 }
 0x224   :  { %v205_v14 = vld [vmem:[#allocation2 + $0x10] sm:$0xff] }
 0x225   :  { %v216_v15 = vadd.f32 %v249_v13, %v205_v14  ;;  %v203_v16 = vld [vmem:[#allocation2] sm:$0xff] }
 0x226   :  { %v214_v17 = vadd.f32 %v249_v13, %v203_v16  ;;  %v206_v18 = vld [vmem:[#allocation2 + $0x18] sm:$0xff] }
 0x227   :  { %v256_v19 = vpack.c.bf16 %v216_v15, %v216_v15  ;;  %v217_v20 = vadd.f32 %v249_v13, %v206_v18  ;;  %v204_v21 = vld [vmem:[#allocation2 + $0x8] sm:$0xff] }
 0x228   :  { %v254_v22 = vpack.c.bf16 %v214_v17, %v214_v17  ;;  %v215_v23 = vadd.f32 %v249_v13, %v204_v21 }
 0x229   :  { %237 = vst.msk [vmem:[%s377_s5 + $0x8] sm:$0xf] %vm234_vm2, %v256_v19  ;;  %v257_v24 = vpack.c.bf16 %v217_v20, %v217_v20 }
 0x22a   :  { %235 = vst.msk [vmem:[%s377_s5] sm:$0xf] %vm234_vm2, %v254_v22  ;;  %v255_v25 = vpack.c.bf16 %v215_v23, %v215_v23 }
 0x22b   :  { %238 = vst.msk [vmem:[%s377_s5 + $0xc] sm:$0xf] %vm234_vm2, %v257_v24 }
 0x22c   :  { %236 = vst.msk [vmem:[%s377_s5 + $0x4] sm:$0xf] %vm234_vm2, %v255_v25 }

// kernel: siglip_vision_forward.14
= control target key start
LH: loop header
LB: loop body
LE: loop exit
PB: predicated region body
PF: predicated region fallthrough
CT: control target
= control target key end

     0   :  { %vm22_vm0 = vcmask 261120   ;;  %vm114_vm1 = vcmask 257024   ;;  %s206_s0 = inlined_call_operand.vmem [shape: bf16[32,32], index: 0, kind: input, shape index: {}]   ;;  %s207_s1 = inlined_call_operand.vmem [shape: f32[1,32], index: 1, kind: input, shape index: {}]   ;;  %s208_s2 = inlined_call_operand.vmem [shape: f32[1,32], index: 2, kind: input, shape index: {}]   ;;  %s209_s3 = inlined_call_operand.vmem [shape: bf16[32,32], index: 3, kind: output, shape index: {}]  }
   0x1   :  { %v134_v0 = vld [vmem:[%s206_s0] sm:$0xff]   ;;  %v141_v1 = vld [vmem:[%s206_s0 + $0x8] sm:$0xff]  }
   0x2   :  { %v135_v2 = vunpack.c.l.bf16 %v134_v0  ;;  %v139_v3 = vunpack.c.l.bf16 %v141_v1  ;;  %v136_v4 = vunpack.c.h.bf16 %v134_v0  ;;  %v140_v5 = vunpack.c.h.bf16 %v141_v1  ;;  %v123_v43 = vld [vmem:[%s207_s1] ss:$0 sm:$0xff] }
   0x3   :  { %v124_v45 = vld [vmem:[%s208_s2] ss:$0 sm:$0xff] }
   0x4   :  { %v23_v6 = vsel %vm22_vm0, %v135_v2, 0.0  ;;  %v29_v7 = vsel %vm22_vm0, %v139_v3, 0.0  ;;  %v26_v8 = vsel %vm22_vm0, %v136_v4, 0.0  ;;  %v32_v9 = vsel %vm22_vm0, %v140_v5, 0.0 }
   0x5   :  { %24 = vadd.xlane.f32.xlu0 %v23_v6  ;;  %30 = vadd.xlane.f32.xlu1 %v29_v7 }
   0x9   :  { %27 = vadd.xlane.f32.xlu0 %v26_v8  ;;  %33 = vadd.xlane.f32.xlu1 %v32_v9 }
  0x92   :  { %v25_v10 = vpop.xlane.xlu0 %24  ;;  %v31_v11 = vpop.xlane.xlu1 %30 }
  0x93   :  { %v36_v12 = vmul.f32 0.03125, %v25_v10  ;;  %v38_v13 = vmul.f32 0.03125, %v31_v11 }
  0x95   :  { %v40_v14 = vsub.f32 %v135_v2, %v36_v12  ;;  %v42_v15 = vsub.f32 %v139_v3, %v38_v13 }
  0x96   :  { %v28_v16 = vpop.xlane.xlu0 %27  ;;  %v34_v17 = vpop.xlane.xlu1 %33 }
  0x97   :  { %v37_v18 = vmul.f32 0.03125, %v28_v16  ;;  %v39_v19 = vmul.f32 0.03125, %v34_v17  ;;  %v44_v20 = vmul.f32 %v40_v14, %v40_v14  ;;  %v46_v21 = vmul.f32 %v42_v15, %v42_v15 }
  0x99   :  { %v41_v22 = vsub.f32 %v136_v4, %v37_v18  ;;  %v43_v23 = vsub.f32 %v140_v5, %v39_v19  ;;  %v48_v24 = vsel %vm22_vm0, %v44_v20, 0.0  ;;  %v54_v25 = vsel %vm22_vm0, %v46_v21, 0.0 }
  0x9a   :  { %49 = vadd.xlane.f32.xlu0 %v48_v24 }
  0x9b   :  { %v45_v26 = vmul.f32 %v41_v22, %v41_v22  ;;  %v47_v27 = vmul.f32 %v43_v23, %v43_v23 }
  0x9d   :  { %v51_v28 = vsel %vm22_vm0, %v45_v26, 0.0  ;;  %v57_v29 = vsel %vm22_vm0, %v47_v27, 0.0 }
  0x9e   :  { %55 = vadd.xlane.f32.xlu0 %v54_v25  ;;  %52 = vadd.xlane.f32.xlu1 %v51_v28 }
  0xa2   :  { %58 = vadd.xlane.f32.xlu1 %v57_v29 }
 0x127   :  { %v50_v30 = vpop.xlane.xlu0 %49 }
 0x128   :  { %v60_v31 = vmul.f32 0.03125, %v50_v30 }
 0x12a   :  { %v64_v32 = vadd.f32 1e-05, %v60_v31 }
 0x12b   :  { %v53_v33 = vpop.xlane.xlu1 %52  ;;  %v56_v34 = vpop.xlane.xlu0 %55 }
 0x12c   :  { %142 = vrsqrt.f32 %v64_v32  ;;  %v61_v35 = vmul.f32 0.03125, %v53_v33  ;;  %v62_v36 = vmul.f32 0.03125, %v56_v34 }
 0x12e   :  { %v65_v37 = vadd.f32 1e-05, %v61_v35  ;;  %v66_v38 = vadd.f32 1e-05, %v62_v36 }
 0x12f   :  { %v59_v39 = vpop.xlane.xlu1 %58 }
 0x130   :  { %144 = vrsqrt.f32 %v65_v37  ;;  %v63_v40 = vmul.f32 0.03125, %v59_v39 }
 0x131   :  { %146 = vrsqrt.f32 %v66_v38 }
 0x132   :  { %v67_v41 = vadd.f32 1e-05, %v63_v40 }
 0x134   :  { %148 = vrsqrt.f32 %v67_v41 }
 0x136   :  { %v143_v42 = vpop.eup %142 }
 0x137   :  { %v72_v44 = vmul.f32 %v143_v42, %v40_v14 }
 0x139   :  { %v83_v46 = vmul.f32 %v123_v43, %v72_v44 }
 0x13a   :  { %v145_v47 = vpop.eup %144 }
 0x13b   :  { %v147_v48 = vpop.eup %146  ;;  %v94_v49 = vadd.f32 %v124_v45, %v83_v46  ;;  %v73_v50 = vmul.f32 %v145_v47, %v41_v22 }
 0x13c   :  { %v74_v51 = vmul.f32 %v147_v48, %v42_v15 }
 0x13d   :  { %v129_v52 = vpack.c.bf16 %v94_v49, %v94_v49  ;;  %v84_v53 = vmul.f32 %v123_v43, %v73_v50 }
 0x13e   :  { %v149_v54 = vpop.eup %148  ;;  %v85_v55 = vmul.f32 %v123_v43, %v74_v51 }
 0x13f   :  { %115 = vst.msk [vmem:[%s209_s3] sm:$0xf] %vm114_vm1, %v129_v52  ;;  %v95_v56 = vadd.f32 %v124_v45, %v84_v53  ;;  %v75_v57 = vmul.f32 %v149_v54, %v43_v23 }
 0x140   :  { %v96_v58 = vadd.f32 %v124_v45, %v85_v55 }
 0x141   :  { %v130_v59 = vpack.c.bf16 %v95_v56, %v95_v56  ;;  %v86_v60 = vmul.f32 %v123_v43, %v75_v57 }
 0x142   :  { %v131_v61 = vpack.c.bf16 %v96_v58, %v96_v58 }
 0x143   :  { %116 = vst.msk [vmem:[%s209_s3 + $0x4] sm:$0xf] %vm114_vm1, %v130_v59  ;;  %v97_v62 = vadd.f32 %v124_v45, %v86_v60 }
 0x144   :  { %117 = vst.msk [vmem:[%s209_s3 + $0x8] sm:$0xf] %vm114_vm1, %v131_v61 }
 0x145   :  { %v132_v63 = vpack.c.bf16 %v97_v62, %v97_v62 }
 0x147   :  { %118 = vst.msk [vmem:[%s209_s3 + $0xc] sm:$0xf] %vm114_vm1, %v132_v63 }

// kernel: siglip_vision_forward.16
= control target key start
LH: loop header
LB: loop body
LE: loop exit
PB: predicated region body
PF: predicated region fallthrough
CT: control target
= control target key end

     0   :  { %s939_s12 = smov 0   ;;  %s941_s13 = smov 0   ;;  %s1025_s0 = inlined_call_operand.vmem [shape: bf16[3,2,4,16,8], index: 0, kind: input, shape index: {}, may-alias: {0,1,2}]   ;;  %s1026_s1 = inlined_call_operand.vmem [shape: bf16[3,2,4,16,8], index: 1, kind: input, shape index: {}, may-alias: {0,1,2}]   ;;  %s1027_s2 = inlined_call_operand.vmem [shape: bf16[3,2,4,16,8], index: 2, kind: input, shape index: {}, may-alias: {0,1,2}]   ;;  %s1028_s3 = inlined_call_operand.vmem [shape: bf16[2,4,16,8], index: 3, kind: output, shape index: {}]  }
   0x1   :  { %s943_s14 = smov 0   ;;  %s945_s15 = smov 0  }
   0x2   :  { %s947_s16 = smov 0  }
   0x3 LB: > { %s35_s17 = sadd.s32 1, %s905_s14  ;;  %s39_s18 = sadd.s32 1, %s909_s15  ;;  %s913_s16 = sphi %s947_s16, %s13_s16   ;;  %s909_s15 = sphi %s945_s15, %s1032_s15   ;;  %s905_s14 = sphi %s943_s14, %s1031_s14   ;;  %s901_s13 = sphi %s941_s13, %s1030_s13   ;;  %s897_s12 = sphi %s939_s12, %s1029_s12  }
   0x4   : > { %p37_p0 = scmp.ge.s32.totalorder %s35_s17, 4  ;;  %p770_p1 = scmp.ge.s32.totalorder %s913_s16, 1 }
   0x5   : > { %p228_p2 = scmp.lt.s32.totalorder %s913_s16, 9 }
   0x6   : > { %s1034_s17 = smov (%p37_p0, %s35_s17), 0  ;;  %s1036_s18 = smov (!%p37_p0, %s39_s18), %s909_s15 }
   0x7   : > { %p229_p3 = pnand %p770_p1, %p228_p2  ;;  %p41_p4 = scmp.ge.s32.totalorder %s1036_s18, 2 }
   0x8   : > { %p297_p5 = scmp.lt.s32.totalorder (!%p229_p3), %s901_s13, 1  ;;  %p299_p6 = scmp.lt.s32.totalorder (!%p229_p3), %s897_s12, 3  ;;  %vm364_vm0 = vcmask (!%p229_p3), 64512   ;;  %v915_v0 = vmov (!%p229_p3), 0.0   ;;  %vm916_vm1 = vmmov (!%p229_p3), 0   ;;  %vm359_vm2 = vcmask (!%p229_p3), 7168  }
   0x9   : > { %s1038_s18 = smov (%p41_p4, %s1036_s18), 0  ;;  %232 = sbr.rel (%p229_p3) target bundleno = 835 (0x343), region = 32 }
   0xa   : > { %802 = vmatprep.subr.bf16.mxu0 (!%p229_p3), %v915_v0  ;;  %365 = vst.msk [vmem:[#allocation4] sm:$0xff] (!%p229_p3), %vm364_vm0, %v915_v0  ;;  %366 = vst.msk [vmem:[#allocation4 + $0x8] sm:$0xff] (!%p229_p3), %vm364_vm0, %v915_v0  ;;  %804 = vmatprep.mubr.msk.bf16.mxu0 (!%p229_p3), %vm916_vm1, %v915_v0  ;;  %v917_v4 = vmov (!%p229_p3), -1e+30   ;;  %v434_v5 = vlaneseq (!%p229_p3)  ;;  %vm443_vm4 = vcmask (!%p229_p3), 130048   ;;  %v918_v17 = vmov (!%p229_p3), 0  }
   0xb   : > { %808 = vmatprep.subr.bf16.mxu1 (!%p229_p3), %v915_v0  ;;  %810 = vmatprep.mubr.msk.bf16.mxu1 (!%p229_p3), %vm916_vm1, %v915_v0  ;;  %360 = vst.msk [vmem:[#allocation2] sm:$0xff] (!%p229_p3), %vm359_vm2, %v917_v4  ;;  %361 = vst.msk [vmem:[#allocation2 + $0x8] sm:$0xff] (!%p229_p3), %vm359_vm2, %v917_v4  ;;  %vm591_vm5 = vcmask (!%p229_p3), 60416  }
   0xc   : > { %362 = vst.msk [vmem:[#allocation3] sm:$0xff] (!%p229_p3), %vm359_vm2, %v915_v0  ;;  %363 = vst.msk [vmem:[#allocation3 + $0x8] sm:$0xff] (!%p229_p3), %vm359_vm2, %v915_v0  ;;  %v435_v6 = vand.u32 (!%p229_p3), 127, %v434_v5  ;;  %858 = vset.pattern.permute.xlu1 (!%p229_p3), %v918_v17  ;;  %859 = vset.pattern.permute.xlu0 (!%p229_p3), %v918_v17 }
   0xe   : > { %vm438_vm3 = vcmp.lt.s32.totalorder (!%p229_p3), %v435_v6, 5 }
  0x10   : > { %s1040_s13 = smov (!%p297_p5, %s901_s13), 1  ;;  %s1042_s12 = smov (!%p299_p6, %s897_s12), 3 }
  0x11   : > { %s772_s19 = sshll.u32 %s1040_s13, 3  ;;  %s771_s20 = sshll.u32 %s1042_s12, 1  ;;  %v491_v56 = vld [vmem:[#allocation4] sm:$0xff]  ;;  %v492_v58 = vld [vmem:[#allocation4 + $0x8] sm:$0xff] }
  0x12   : > { %s306_s21 = sadd.s32 %s772_s19, %s771_s20  ;;  %v441_v18 = vld [vmem:[#allocation2] sm:$0xff]  ;;  %v442_v21 = vld [vmem:[#allocation2 + $0x8] sm:$0xff] }
  0x13   : > { %s971_s22 = sshll.u32 %s306_s21, 2  ;;  %v476_v44 = vld [vmem:[#allocation3] sm:$0xff]  ;;  %v477_v47 = vld [vmem:[#allocation3 + $0x8] sm:$0xff] }
  0x14   : > { %s689_s25 = scalar_lea.vmem %s1026_s1, %s971_s22  ;;  %s308_s28 = scalar_lea.vmem %s1025_s0, %s971_s22 }
  0x15   : > { %v860_v1 = vld [vmem:[%s689_s25 + $0x40] sm:$0xff]   ;;  %s696_s4 = scalar_lea.vmem %s1027_s2, %s971_s22  ;;  %s352_s7 = scalar_lea.vmem %s1028_s3, %s971_s22 }
  0x16   : > { %v388_v2 = vsel %vm364_vm0, %v860_v1, 0  ;;  %v861_v3 = vld [vmem:[%s308_s28] sm:$0xff]  }
  0x17   : > { %803 = vmatpush3.bf16.xpose.msra.mxu0 %v388_v2  ;;  %v862_v26 = vld [vmem:[%s696_s4 + $0x80] sm:$0xff]  }
  0x18   : > { %809 = vmatpush3.bf16.msra.mxu1 %v862_v26 }
  0x1e   : > { %805 = vmatmul.mubr.msk.bf16.vlgmr.msra.gmra.mrb[0].mxu0 %vm364_vm0, %v861_v3 }
  0xf1   : > { %v424_v7 = vpop.f32.mrb[0].mxu0 }
  0xf2   : > { %v431_v8 = vmul.f32 0.35355338, %v424_v7  ;;  %v806_v9 = vpop.f32.mrb[1].mxu0 }
  0xf3   : > { %v427_v10 = vpop.f32.mrb[2].mxu0 }
  0xf4   : > { %v432_v11 = vmul.f32 0.35355338, %v427_v10  ;;  %v807_v12 = vpop.f32.mrb[3].mxu0  ;;  %v439_v13 = vsel %vm438_vm3, %v431_v8, -1e+30 }
  0xf5   : > { %v444_v14 = vsel %vm443_vm4, %v439_v13, -inf }
  0xf6   : > { %445 = vmax.xlane.f32.xlu0 %v444_v14  ;;  %v440_v15 = vsel %vm438_vm3, %v432_v11, -1e+30 }
  0xf7   : > { %v447_v16 = vsel %vm443_vm4, %v440_v15, -inf }
  0xfa   : > { %448 = vmax.xlane.f32.xlu0 %v447_v16 }
 0x183   : > { %v446_v19 = vpop.xlane.xlu0 %445 }
 0x184   : > { %v450_v20 = vmax.f32 %v441_v18, %v446_v19 }
 0x186   : > { %v452_v22 = vsub.f32 %v441_v18, %v450_v20  ;;  %560 = vst.msk [vmem:[#allocation2] sm:$0xff] %vm359_vm2, %v450_v20  ;;  %460 = vperm.xlu1 %858, %v450_v20  }
 0x187   : > { %v449_v23 = vpop.xlane.xlu0 %448 }
 0x188   : > { %v451_v24 = vmax.f32 %v442_v21, %v449_v23  ;;  %v454_v41 = vmul.f32 1.442695, %v452_v22 }
 0x18a   : > { %v453_v25 = vsub.f32 %v442_v21, %v451_v24  ;;  %561 = vst.msk [vmem:[#allocation2 + $0x8] sm:$0xff] %vm359_vm2, %v451_v24  ;;  %465 = vperm.xlu1 %858, %v451_v24  }
 0x18c   : > { %v456_v40 = vmul.f32 1.442695, %v453_v25 }
 0x205   : > { %v461_v27 = vpop.permute.xlu1 %460 }
 0x206   : > { %v468_v28 = vsub.f32 %v439_v13, %v461_v27 }
 0x208   : > { %v470_v29 = vmul.f32 1.442695, %v468_v28 }
 0x209   : > { %v466_v30 = vpop.permute.xlu1 %465 }
 0x20a   : > { %863 = vpow2.f32 %v470_v29  ;;  %v469_v31 = vsub.f32 %v440_v15, %v466_v30 }
 0x20c   : > { %v472_v32 = vmul.f32 1.442695, %v469_v31 }
 0x20e   : > { %865 = vpow2.f32 %v472_v32 }
 0x20f   : > { %867 = vpow2.f32 %v456_v40 }
 0x210   : > { %869 = vpow2.f32 %v454_v41 }
 0x214   : > { %v864_v33 = vpop.eup %863 }
 0x215   : > { %v474_v34 = vsel %vm438_vm3, %v864_v33, 0.0 }
 0x216   : > { %v480_v35 = vsel %vm443_vm4, %v474_v34, 0.0 }
 0x217   : > { %481 = vadd.xlane.f32.xlu0 %v480_v35 }
 0x218   : > { %v866_v36 = vpop.eup %865 }
 0x219   : > { %v475_v37 = vsel %vm438_vm3, %v866_v36, 0.0  ;;  %v868_v42 = vpop.eup %867 }
 0x21a   : > { %v483_v38 = vsel %vm443_vm4, %v475_v37, 0.0  ;;  %v505_v39 = vpack.c.bf16 %v475_v37, %v474_v34  ;;  %v870_v43 = vpop.eup %869  ;;  %v479_v49 = vmul.f32 %v868_v42, %v477_v47 }
 0x21b   : > { %484 = vadd.xlane.f32.xlu1 %v483_v38  ;;  %v478_v45 = vmul.f32 %v870_v43, %v476_v44 }
 0x21c   : > { %811 = vmatmul.mubr.msk.bf16.vlgmr.msra.gmra.mrb[0].mxu1 %vm443_vm4, %v505_v39 }
 0x22c   : > { %500 = vperm.xlu1 %858, %v868_v42  }
 0x22d   : > { %495 = vperm.xlu0 %859, %v870_v43  }
 0x2a4   : > { %v482_v46 = vpop.xlane.xlu0 %481 }
 0x2a5   : > { %v486_v48 = vadd.f32 %v482_v46, %v478_v45 }
 0x2a7   : > { %489 = vst.msk [vmem:[#allocation3] sm:$0xff] %vm359_vm2, %v486_v48 }
 0x2a8   : > { %v485_v50 = vpop.xlane.xlu1 %484 }
 0x2a9   : > { %v487_v51 = vadd.f32 %v485_v50, %v479_v49 }
 0x2ab   : > { %490 = vst.msk [vmem:[#allocation3 + $0x8] sm:$0xff] %vm359_vm2, %v487_v51 }
 0x2ac   : > { %v496_v57 = vpop.permute.xlu0 %495  ;;  %v501_v59 = vpop.permute.xlu1 %500 }
 0x2ad   : > { %v503_v60 = vmul.f32 %v496_v57, %v491_v56  ;;  %v504_v62 = vmul.f32 %v501_v59, %v492_v58 }
 0x2ae   : > { %v567_v52 = vld [vmem:[#allocation3] sm:$0xff] }
 0x2af   : > { %871 = vrcp.f32 %v567_v52 }
 0x2b2   : > { %v568_v53 = vld [vmem:[#allocation3 + $0x8] sm:$0xff] }
 0x2b3   : > { %873 = vrcp.f32 %v568_v53 }
 0x2b9   : > { %v872_v54 = vpop.eup %871 }
 0x2ba   : > { %573 = vperm.xlu0 %859, %v872_v54  }
 0x2bd   : > { %v874_v55 = vpop.eup %873 }
 0x2be   : > { %578 = vperm.xlu0 %859, %v874_v55  }
 0x2ef   : > { %v549_v61 = vpop.f32.mrb[0].mxu1 }
 0x2f0   : > { %v556_v63 = vadd.f32 %v549_v61, %v503_v60  ;;  %v812_v0 = vpop.f32.mrb[1].mxu1 }
 0x2f1   : > { %v552_v1 = vpop.f32.mrb[2].mxu1 }
 0x2f2   : > { %558 = vst.msk [vmem:[#allocation4] sm:$0xff] %vm364_vm0, %v556_v63  ;;  %v557_v2 = vadd.f32 %v552_v1, %v504_v62  ;;  %v813_v3 = vpop.f32.mrb[3].mxu1 }
 0x2f4   : > { %559 = vst.msk [vmem:[#allocation4 + $0x8] sm:$0xff] %vm364_vm0, %v557_v2 }
 0x2f9   : > { %v565_v4 = vld [vmem:[#allocation4] sm:$0xff] }
 0x2fb   : > { %v566_v8 = vld [vmem:[#allocation4 + $0x8] sm:$0xff] }
 0x339   : > { %v574_v5 = vpop.permute.xlu0 %573 }
 0x33a   : > { %v581_v6 = vmul.f32 %v574_v5, %v565_v4 }
 0x33c   : > { %v796_v7 = vpack.c.bf16 %v581_v6, %v581_v6 }
 0x33d   : > { %v579_v9 = vpop.permute.xlu0 %578 }
 0x33e   : > { %592 = vst.msk [vmem:[%s352_s7] sm:$0xf] %vm591_vm5, %v796_v7  ;;  %v582_v10 = vmul.f32 %v579_v9, %v566_v8 }
 0x340   : > { %v797_v11 = vpack.c.bf16 %v582_v10, %v582_v10 }
 0x342   : > { %593 = vst.msk [vmem:[%s352_s7 + $0x4] sm:$0xf] %vm591_vm5, %v797_v11 }
 0x343 PF: > { %s13_s16 = sadd.s32 1, %s913_s16   ;;  %s1029_s12 = smov %s905_s14 }
 0x344   : > { %p10_p7 = scmp.ge.s32.totalorder %s13_s16, 10   ;;  %s1030_s13 = smov %s909_s15 }
 0x345   : > { %s1031_s14 = smov %s1034_s17  ;;  %s1032_s15 = smov %s1038_s18 }
 0x346   :  { %12 = sbr.rel (!%p10_p7) target bundleno = 3 (0x3), region = 76 }

// kernel: siglip_vision_forward.17
= control target key start
LH: loop header
LB: loop body
LE: loop exit
PB: predicated region body
PF: predicated region fallthrough
CT: control target
= control target key end

     0   :  { %vm22_vm0 = vcmask 261120   ;;  %v221_v1 = vmov 0.0   ;;  %vm171_vm1 = vcmask 257024   ;;  %s290_s1 = inlined_call_operand.vmem [shape: bf16[32,32], index: 1, kind: input, shape index: {}]   ;;  %s291_s0 = inlined_call_operand.vmem [shape: bf16[32,32], index: 0, kind: input, shape index: {}]   ;;  %s292_s3 = inlined_call_operand.vmem [shape: bf16[32,32], index: 3, kind: input, shape index: {}]   ;;  %s293_s2 = inlined_call_operand.vmem [shape: f32[1,32], index: 2, kind: input, shape index: {}]   ;;  %s294_s4 = inlined_call_operand.vmem [shape: bf16[32,32], index: 4, kind: output, shape index: {}]  }
   0x1   :  { %v217_v0 = vld [vmem:[%s290_s1] sm:$0xff]   ;;  %25 = vst.msk [vmem:[#allocation2 + $0x10] sm:$0xff] %vm22_vm0, %v221_v1  ;;  %23 = vst.msk [vmem:[#allocation2] sm:$0xff] %vm22_vm0, %v221_v1  ;;  %v218_v2 = vld [vmem:[%s290_s1 + $0x8] sm:$0xff]  }
   0x2   :  { %24 = vst.msk [vmem:[#allocation2 + $0x8] sm:$0xff] %vm22_vm0, %v221_v1  ;;  %26 = vst.msk [vmem:[#allocation2 + $0x18] sm:$0xff] %vm22_vm0, %v221_v1  ;;  %208 = vmatprep.subr.bf16.mxu0 %v217_v0  ;;  %v219_v3 = vld [vmem:[%s291_s0] sm:$0xff]   ;;  %v220_v4 = vld [vmem:[%s291_s0 + $0x8] sm:$0xff]  }
   0x3   :  { %209 = vmatpush3.bf16.msra.mxu0 %v217_v0  ;;  %212 = vmatprep.mubr.msk.bf16.mxu0 %vm22_vm0, %v219_v3  ;;  %v203_v17 = vld [vmem:[%s292_s3 + $0x8] sm:$0xff]   ;;  %v196_v18 = vld [vmem:[%s292_s3] sm:$0xff]  }
   0x4   :  { %210 = vmatprep.subr.bf16.mxu0 %v218_v2  ;;  %v186_v19 = vld [vmem:[%s293_s2] ss:$0 sm:$0xff]  ;;  %v201_v20 = vunpack.c.l.bf16 %v203_v17  ;;  %v197_v22 = vunpack.c.l.bf16 %v196_v18  ;;  %v202_v25 = vunpack.c.h.bf16 %v203_v17  ;;  %v198_v28 = vunpack.c.h.bf16 %v196_v18 }
   0x7   :  { %211 = vmatpush3.bf16.msra.mxu0 %v218_v2 }
   0x8   :  { %v33_v5 = vld [vmem:[#allocation2 + $0x10] sm:$0xff]  ;;  %v31_v6 = vld [vmem:[#allocation2] sm:$0xff] }
   0x9   :  { %v34_v8 = vld [vmem:[#allocation2 + $0x18] sm:$0xff]  ;;  %v32_v11 = vld [vmem:[#allocation2 + $0x8] sm:$0xff] }
   0xa   :  { %213 = vmatmul.mubr.msk.bf16.vlgmr.msra.gmra.mrb[0].mxu0 %vm22_vm0, %v220_v4 }
  0xdd   :  { %v214_v7 = vpop.f32.mrb[0].mxu0 }
  0xde   :  { %v119_v9 = vadd.f32 %v214_v7, %v33_v5  ;;  %v102_v10 = vpop.f32.mrb[1].mxu0 }
  0xdf   :  { %v117_v12 = vadd.f32 %v102_v10, %v31_v6  ;;  %v215_v13 = vpop.f32.mrb[2].mxu0 }
  0xe0   :  { %123 = vst.msk [vmem:[#allocation2 + $0x10] sm:$0xff] %vm22_vm0, %v119_v9  ;;  %v120_v14 = vadd.f32 %v215_v13, %v34_v8  ;;  %v105_v15 = vpop.f32.mrb[3].mxu0 }
  0xe1   :  { %121 = vst.msk [vmem:[#allocation2] sm:$0xff] %vm22_vm0, %v117_v12  ;;  %v118_v16 = vadd.f32 %v105_v15, %v32_v11 }
  0xe2   :  { %124 = vst.msk [vmem:[#allocation2 + $0x18] sm:$0xff] %vm22_vm0, %v120_v14 }
  0xe3   :  { %122 = vst.msk [vmem:[#allocation2 + $0x8] sm:$0xff] %vm22_vm0, %v118_v16 }
  0xe7   :  { %v130_v21 = vld [vmem:[#allocation2 + $0x10] sm:$0xff] }
  0xe8   :  { %v141_v23 = vadd.f32 %v186_v19, %v130_v21  ;;  %v128_v24 = vld [vmem:[#allocation2] sm:$0xff] }
  0xe9   :  { %v139_v26 = vadd.f32 %v186_v19, %v128_v24  ;;  %v131_v27 = vld [vmem:[#allocation2 + $0x18] sm:$0xff] }
  0xea   :  { %v153_v29 = vadd.f32 %v201_v20, %v141_v23  ;;  %v142_v30 = vadd.f32 %v186_v19, %v131_v27  ;;  %v129_v31 = vld [vmem:[#allocation2 + $0x8] sm:$0xff] }
  0xeb   :  { %v151_v32 = vadd.f32 %v197_v22, %v139_v26  ;;  %v140_v33 = vadd.f32 %v186_v19, %v129_v31 }
  0xec   :  { %v193_v34 = vpack.c.bf16 %v153_v29, %v153_v29  ;;  %v154_v35 = vadd.f32 %v202_v25, %v142_v30 }
  0xed   :  { %v191_v36 = vpack.c.bf16 %v151_v32, %v151_v32  ;;  %v152_v37 = vadd.f32 %v198_v28, %v140_v33 }
  0xee   :  { %174 = vst.msk [vmem:[%s294_s4 + $0x8] sm:$0xf] %vm171_vm1, %v193_v34  ;;  %v194_v38 = vpack.c.bf16 %v154_v35, %v154_v35 }
  0xef   :  { %172 = vst.msk [vmem:[%s294_s4] sm:$0xf] %vm171_vm1, %v191_v36  ;;  %v192_v39 = vpack.c.bf16 %v152_v37, %v152_v37 }
  0xf0   :  { %175 = vst.msk [vmem:[%s294_s4 + $0xc] sm:$0xf] %vm171_vm1, %v194_v38 }
  0xf1   :  { %173 = vst.msk [vmem:[%s294_s4 + $0x4] sm:$0xf] %vm171_vm1, %v192_v39 }

// kernel: siglip_vision_forward.19
= control target key start
LH: loop header
LB: loop body
LE: loop exit
PB: predicated region body
PF: predicated region fallthrough
CT: control target
= control target key end

     0   :  { %vm22_vm0 = vcmask 261120   ;;  %v248_v1 = vmov 0.0   ;;  %vm77_vm1 = vcmask 523264   ;;  %vm188_vm2 = vcmask 257024   ;;  %s321_s1 = inlined_call_operand.vmem [shape: bf16[64,32], index: 1, kind: input, shape index: {}]   ;;  %s322_s0 = inlined_call_operand.vmem [shape: bf16[32,64], index: 0, kind: input, shape index: {}]   ;;  %s323_s3 = inlined_call_operand.vmem [shape: bf16[32,32], index: 3, kind: input, shape index: {}]   ;;  %s324_s2 = inlined_call_operand.vmem [shape: f32[1,32], index: 2, kind: input, shape index: {}]   ;;  %s325_s4 = inlined_call_operand.vmem [shape: bf16[32,32], index: 4, kind: output, shape index: {}]  }
   0x1   :  { %v242_v0 = vld [vmem:[%s321_s1] sm:$0xff]   ;;  %25 = vst.msk [vmem:[#allocation2 + $0x10] sm:$0xff] %vm22_vm0, %v248_v1  ;;  %23 = vst.msk [vmem:[#allocation2] sm:$0xff] %vm22_vm0, %v248_v1  ;;  %v243_v2 = vld [vmem:[%s321_s1 + $0x8] sm:$0xff]  }
   0x2   :  { %24 = vst.msk [vmem:[#allocation2 + $0x8] sm:$0xff] %vm22_vm0, %v248_v1  ;;  %26 = vst.msk [vmem:[#allocation2 + $0x18] sm:$0xff] %vm22_vm0, %v248_v1  ;;  %229 = vmatprep.subr.bf16.mxu0 %v242_v0  ;;  %v244_v3 = vld [vmem:[%s321_s1 + $0x10] sm:$0xff]   ;;  %v246_v4 = vld [vmem:[%s322_s0] sm:$0xff]  }
   0x3   :  { %230 = vmatpush3.bf16.msra.mxu0 %v242_v0  ;;  %237 = vmatprep.mubr.msk.bf16.mxu0 %vm77_vm1, %v246_v4  ;;  %v245_v5 = vld [vmem:[%s321_s1 + $0x18] sm:$0xff]   ;;  %v247_v6 = vld [vmem:[%s322_s0 + $0x8] sm:$0xff]   ;;  %v215_v20 = vld [vmem:[%s323_s3] sm:$0xff]  }
   0x4   :  { %231 = vmatprep.subr.bf16.mxu0 %v243_v2  ;;  %v222_v19 = vld [vmem:[%s323_s3 + $0x8] sm:$0xff]   ;;  %v205_v21 = vld [vmem:[%s324_s2] ss:$0 sm:$0xff]  ;;  %v216_v24 = vunpack.c.l.bf16 %v215_v20  ;;  %v217_v30 = vunpack.c.h.bf16 %v215_v20 }
   0x5   :  { %v220_v22 = vunpack.c.l.bf16 %v222_v19  ;;  %v221_v27 = vunpack.c.h.bf16 %v222_v19 }
   0x7   :  { %232 = vmatpush3.bf16.msra.mxu0 %v243_v2 }
   0x8   :  { %233 = vmatprep.subr.bf16.mxu0 %v244_v3  ;;  %v33_v7 = vld [vmem:[#allocation2 + $0x10] sm:$0xff]  ;;  %v31_v8 = vld [vmem:[#allocation2] sm:$0xff] }
   0x9   :  { %v34_v10 = vld [vmem:[#allocation2 + $0x18] sm:$0xff]  ;;  %v32_v13 = vld [vmem:[#allocation2 + $0x8] sm:$0xff] }
   0xb   :  { %234 = vmatpush3.bf16.msra.mxu0 %v244_v3 }
   0xc   :  { %235 = vmatprep.subr.bf16.mxu0 %v245_v5 }
   0xf   :  { %236 = vmatpush3.bf16.msra.mxu0 %v245_v5 }
  0x12   :  { %238 = vmatmul.mubr.msk.bf16.vlgmr.msra.gmra.mrb[0].mxu0 %vm77_vm1, %v247_v6 }
  0xe5   :  { %v239_v9 = vpop.f32.mrb[0].mxu0 }
  0xe6   :  { %v135_v11 = vadd.f32 %v239_v9, %v33_v7  ;;  %v118_v12 = vpop.f32.mrb[1].mxu0 }
  0xe7   :  { %v133_v14 = vadd.f32 %v118_v12, %v31_v8  ;;  %v240_v15 = vpop.f32.mrb[2].mxu0 }
  0xe8   :  { %140 = vst.msk [vmem:[#allocation2 + $0x10] sm:$0xff] %vm22_vm0, %v135_v11  ;;  %v136_v16 = vadd.f32 %v240_v15, %v34_v10  ;;  %v121_v17 = vpop.f32.mrb[3].mxu0 }
  0xe9   :  { %138 = vst.msk [vmem:[#allocation2] sm:$0xff] %vm22_vm0, %v133_v14  ;;  %v134_v18 = vadd.f32 %v121_v17, %v32_v13 }
  0xea   :  { %141 = vst.msk [vmem:[#allocation2 + $0x18] sm:$0xff] %vm22_vm0, %v136_v16 }
  0xeb   :  { %139 = vst.msk [vmem:[#allocation2 + $0x8] sm:$0xff] %vm22_vm0, %v134_v18 }
  0xef   :  { %v147_v23 = vld [vmem:[#allocation2 + $0x10] sm:$0xff] }
  0xf0   :  { %v158_v25 = vadd.f32 %v205_v21, %v147_v23  ;;  %v145_v26 = vld [vmem:[#allocation2] sm:$0xff] }
  0xf1   :  { %v156_v28 = vadd.f32 %v205_v21, %v145_v26  ;;  %v148_v29 = vld [vmem:[#allocation2 + $0x18] sm:$0xff] }
  0xf2   :  { %v170_v31 = vadd.f32 %v220_v22, %v158_v25  ;;  %v159_v32 = vadd.f32 %v205_v21, %v148_v29  ;;  %v146_v33 = vld [vmem:[#allocation2 + $0x8] sm:$0xff] }
  0xf3   :  { %v168_v34 = vadd.f32 %v216_v24, %v156_v28  ;;  %v157_v35 = vadd.f32 %v205_v21, %v146_v33 }
  0xf4   :  { %v212_v36 = vpack.c.bf16 %v170_v31, %v170_v31  ;;  %v171_v37 = vadd.f32 %v221_v27, %v159_v32 }
  0xf5   :  { %v210_v38 = vpack.c.bf16 %v168_v34, %v168_v34  ;;  %v169_v39 = vadd.f32 %v217_v30, %v157_v35 }
  0xf6   :  { %191 = vst.msk [vmem:[%s325_s4 + $0x8] sm:$0xf] %vm188_vm2, %v212_v36  ;;  %v213_v40 = vpack.c.bf16 %v171_v37, %v171_v37 }
  0xf7   :  { %189 = vst.msk [vmem:[%s325_s4] sm:$0xf] %vm188_vm2, %v210_v38  ;;  %v211_v41 = vpack.c.bf16 %v169_v39, %v169_v39 }
  0xf8   :  { %192 = vst.msk [vmem:[%s325_s4 + $0xc] sm:$0xf] %vm188_vm2, %v213_v40 }
  0xf9   :  { %190 = vst.msk [vmem:[%s325_s4 + $0x4] sm:$0xf] %vm188_vm2, %v211_v41 }

// kernel: siglip_vision_forward.18
= control target key start
LH: loop header
LB: loop body
LE: loop exit
PB: predicated region body
PF: predicated region fallthrough
CT: control target
= control target key end

     0   :  { %vm38_vm0 = vcmask 261120   ;;  %vm25_vm1 = vcmask 523264   ;;  %v415_v32 = vmov 0.0   ;;  %vm342_vm6 = vcmask 519168   ;;  %s534_s0 = inlined_call_operand.vmem [shape: bf16[32,32], index: 0, kind: input, shape index: {}]   ;;  %s535_s3 = inlined_call_operand.vmem [shape: bf16[32,64], index: 3, kind: input, shape index: {}]   ;;  %s536_s1 = inlined_call_operand.vmem [shape: f32[1,32], index: 1, kind: input, shape index: {}]   ;;  %s537_s2 = inlined_call_operand.vmem [shape: f32[1,32], index: 2, kind: input, shape index: {}]   ;;  %s538_s4 = inlined_call_operand.vmem [shape: f32[1,64], index: 4, kind: input, shape index: {}]   ;;  %s539_s5 = inlined_call_operand.vmem [shape: bf16[32,64], index: 5, kind: output, shape index: {}]  }
   0x1   :  { %v367_v0 = vld [vmem:[%s534_s0] sm:$0xff]   ;;  %v374_v1 = vld [vmem:[%s534_s0 + $0x8] sm:$0xff]   ;;  %28 = vst.msk [vmem:[#allocation2 + $0x10] sm:$0xff] %vm25_vm1, %v415_v32  ;;  %26 = vst.msk [vmem:[#allocation2] sm:$0xff] %vm25_vm1, %v415_v32 }
   0x2   :  { %v368_v2 = vunpack.c.l.bf16 %v367_v0  ;;  %v372_v3 = vunpack.c.l.bf16 %v374_v1  ;;  %v369_v4 = vunpack.c.h.bf16 %v367_v0  ;;  %v373_v5 = vunpack.c.h.bf16 %v374_v1  ;;  %v389_v30 = vld [vmem:[%s535_s3] sm:$0xff]   ;;  %v390_v31 = vld [vmem:[%s535_s3 + $0x8] sm:$0xff]   ;;  %27 = vst.msk [vmem:[#allocation2 + $0x8] sm:$0xff] %vm25_vm1, %v415_v32  ;;  %29 = vst.msk [vmem:[#allocation2 + $0x18] sm:$0xff] %vm25_vm1, %v415_v32 }
   0x3   :  { %379 = vmatprep.subr.bf16.mxu0 %v389_v30  ;;  %v351_v47 = vld [vmem:[%s536_s1] ss:$0 sm:$0xff] }
   0x4   :  { %v39_v6 = vsel %vm38_vm0, %v368_v2, 0.0  ;;  %v45_v7 = vsel %vm38_vm0, %v372_v3, 0.0  ;;  %v42_v8 = vsel %vm38_vm0, %v369_v4, 0.0  ;;  %v48_v9 = vsel %vm38_vm0, %v373_v5, 0.0  ;;  %380 = vmatpush3.bf16.msra.mxu0 %v389_v30  ;;  %v352_v53 = vld [vmem:[%s537_s2] ss:$0 sm:$0xff] }
   0x5   :  { %40 = vadd.xlane.f32.xlu0 %v39_v6  ;;  %46 = vadd.xlane.f32.xlu1 %v45_v7 }
   0x6   :  { %381 = vmatprep.subr.bf16.mxu0 %v390_v31 }
   0x8   :  { %382 = vmatpush3.bf16.msra.mxu0 %v390_v31  ;;  %v118_v1 = vld [vmem:[#allocation2 + $0x10] sm:$0xff] }
   0x9   :  { %43 = vadd.xlane.f32.xlu0 %v42_v8  ;;  %49 = vadd.xlane.f32.xlu1 %v48_v9  ;;  %v117_v7 = vld [vmem:[#allocation2 + $0x8] sm:$0xff] }
  0x92   :  { %v41_v10 = vpop.xlane.xlu0 %40  ;;  %v47_v11 = vpop.xlane.xlu1 %46 }
  0x93   :  { %v52_v12 = vmul.f32 0.03125, %v41_v10  ;;  %v54_v13 = vmul.f32 0.03125, %v47_v11 }
  0x95   :  { %v56_v14 = vsub.f32 %v368_v2, %v52_v12  ;;  %v58_v15 = vsub.f32 %v372_v3, %v54_v13  ;;  %v116_v2 = vld [vmem:[#allocation2] sm:$0xff] }
  0x96   :  { %v44_v16 = vpop.xlane.xlu0 %43  ;;  %v50_v17 = vpop.xlane.xlu1 %49  ;;  %v357_v13 = vld [vmem:[%s538_s4] ss:$0 sm:$0xff] }
  0x97   :  { %v53_v18 = vmul.f32 0.03125, %v44_v16  ;;  %v55_v19 = vmul.f32 0.03125, %v50_v17  ;;  %v60_v20 = vmul.f32 %v56_v14, %v56_v14  ;;  %v62_v21 = vmul.f32 %v58_v15, %v58_v15 }
  0x99   :  { %v57_v22 = vsub.f32 %v369_v4, %v53_v18  ;;  %v59_v23 = vsub.f32 %v373_v5, %v55_v19  ;;  %v64_v24 = vsel %vm38_vm0, %v60_v20, 0.0  ;;  %v70_v25 = vsel %vm38_vm0, %v62_v21, 0.0  ;;  %v119_v4 = vld [vmem:[#allocation2 + $0x18] sm:$0xff] }
  0x9a   :  { %65 = vadd.xlane.f32.xlu0 %v64_v24 }
  0x9b   :  { %v61_v26 = vmul.f32 %v57_v22, %v57_v22  ;;  %v63_v27 = vmul.f32 %v59_v23, %v59_v23 }
  0x9d   :  { %v67_v28 = vsel %vm38_vm0, %v61_v26, 0.0  ;;  %v73_v29 = vsel %vm38_vm0, %v63_v27, 0.0 }
  0x9e   :  { %71 = vadd.xlane.f32.xlu0 %v70_v25  ;;  %68 = vadd.xlane.f32.xlu1 %v67_v28 }
  0xa2   :  { %74 = vadd.xlane.f32.xlu1 %v73_v29 }
 0x127   :  { %v66_v33 = vpop.xlane.xlu0 %65 }
 0x128   :  { %v76_v34 = vmul.f32 0.03125, %v66_v33 }
 0x12a   :  { %v80_v35 = vadd.f32 1e-05, %v76_v34 }
 0x12b   :  { %v69_v36 = vpop.xlane.xlu1 %68  ;;  %v72_v37 = vpop.xlane.xlu0 %71 }
 0x12c   :  { %391 = vrsqrt.f32 %v80_v35  ;;  %v77_v38 = vmul.f32 0.03125, %v69_v36  ;;  %v78_v39 = vmul.f32 0.03125, %v72_v37 }
 0x12e   :  { %v81_v40 = vadd.f32 1e-05, %v77_v38  ;;  %v82_v41 = vadd.f32 1e-05, %v78_v39 }
 0x12f   :  { %v75_v42 = vpop.xlane.xlu1 %74 }
 0x130   :  { %393 = vrsqrt.f32 %v81_v40  ;;  %v79_v43 = vmul.f32 0.03125, %v75_v42 }
 0x131   :  { %395 = vrsqrt.f32 %v82_v41 }
 0x132   :  { %v83_v44 = vadd.f32 1e-05, %v79_v43 }
 0x134   :  { %397 = vrsqrt.f32 %v83_v44 }
 0x136   :  { %v392_v45 = vpop.eup %391 }
 0x137   :  { %v88_v46 = vmul.f32 %v392_v45, %v56_v14 }
 0x139   :  { %v99_v51 = vmul.f32 %v351_v47, %v88_v46 }
 0x13a   :  { %v394_v48 = vpop.eup %393 }
 0x13b   :  { %v396_v49 = vpop.eup %395  ;;  %v89_v50 = vmul.f32 %v394_v48, %v57_v22  ;;  %v110_v57 = vadd.f32 %v352_v53, %v99_v51 }
 0x13c   :  { %v90_v52 = vmul.f32 %v396_v49, %v58_v15 }
 0x13d   :  { %v100_v54 = vmul.f32 %v351_v47, %v89_v50 }
 0x13e   :  { %v398_v55 = vpop.eup %397  ;;  %v101_v59 = vmul.f32 %v351_v47, %v90_v52 }
 0x13f   :  { %v91_v56 = vmul.f32 %v398_v55, %v59_v23  ;;  %v111_v58 = vadd.f32 %v352_v53, %v100_v54 }
 0x140   :  { %v112_v62 = vadd.f32 %v352_v53, %v101_v59 }
 0x141   :  { %v114_v60 = vpack.c.bf16 %v111_v58, %v110_v57  ;;  %v102_v61 = vmul.f32 %v351_v47, %v91_v56 }
 0x143   :  { %383 = vmatprep.mubr.msk.bf16.mxu0 %vm38_vm0, %v114_v60  ;;  %v113_v63 = vadd.f32 %v352_v53, %v102_v61 }
 0x145   :  { %v115_v0 = vpack.c.bf16 %v113_v63, %v112_v62 }
 0x147   :  { %384 = vmatmul.mubr.msk.bf16.vlgmr.msra.gmra.mrb[0].mxu0 %vm38_vm0, %v115_v0 }
 0x21a   :  { %v385_v3 = vpop.f32.mrb[0].mxu0 }
 0x21b   :  { %v193_v5 = vadd.f32 %v385_v3, %v118_v1  ;;  %v176_v6 = vpop.f32.mrb[1].mxu0 }
 0x21c   :  { %v191_v8 = vadd.f32 %v176_v6, %v116_v2  ;;  %v386_v9 = vpop.f32.mrb[2].mxu0 }
 0x21d   :  { %198 = vst.msk [vmem:[#allocation2 + $0x10] sm:$0xff] %vm25_vm1, %v193_v5  ;;  %v194_v10 = vadd.f32 %v386_v9, %v119_v4  ;;  %v179_v11 = vpop.f32.mrb[3].mxu0 }
 0x21e   :  { %196 = vst.msk [vmem:[#allocation2] sm:$0xff] %vm25_vm1, %v191_v8  ;;  %v192_v12 = vadd.f32 %v179_v11, %v117_v7 }
 0x21f   :  { %199 = vst.msk [vmem:[#allocation2 + $0x18] sm:$0xff] %vm25_vm1, %v194_v10 }
 0x220   :  { %197 = vst.msk [vmem:[#allocation2 + $0x8] sm:$0xff] %vm25_vm1, %v192_v12 }
 0x224   :  { %v205_v14 = vld [vmem:[#allocation2 + $0x10] sm:$0xff] }
 0x225   :  { %v486_v15 = vadd.f32 %v357_v13, %v205_v14  ;;  %v203_v16 = vld [vmem:[#allocation2] sm:$0xff] }
 0x226   :  { %v488_v17 = vadd.f32 %v357_v13, %v203_v16  ;;  %v206_v18 = vld [vmem:[#allocation2 + $0x18] sm:$0xff] }
 0x227   :  { %v491_v19 = vmul.f32 0.70710677, %v486_v15  ;;  %v493_v20 = vadd.f32 %v357_v13, %v206_v18  ;;  %v204_v21 = vld [vmem:[#allocation2 + $0x8] sm:$0xff] }
 0x228   :  { %v496_v22 = vmul.f32 0.70710677, %v488_v17  ;;  %v502_v25 = vadd.f32 %v357_v13, %v204_v21 }
 0x229   :  { %v236_v23 = vand.u32 2147483647, %v491_v19  ;;  %v500_v24 = vmul.f32 0.70710677, %v493_v20  ;;  %vm228_vm2 = vcmp.ge.f32.partialorder %v491_v19, 0.0 }
 0x22a   :  { %v234_v26 = vand.u32 2147483647, %v496_v22  ;;  %v507_v31 = vmul.f32 0.70710677, %v502_v25  ;;  %vm226_vm3 = vcmp.ge.f32.partialorder %v496_v22, 0.0 }
 0x22b   :  { %v240_v27 = vmul.f32 0.3275911, %v236_v23  ;;  %v237_v29 = vand.u32 2147483647, %v500_v24  ;;  %v292_v38 = vsub.f32 0.0, %v236_v23  ;;  %vm229_vm4 = vcmp.ge.f32.partialorder %v500_v24, 0.0 }
 0x22c   :  { %v238_v28 = vmul.f32 0.3275911, %v234_v26  ;;  %v235_v34 = vand.u32 2147483647, %v507_v31  ;;  %v290_v39 = vsub.f32 0.0, %v234_v26  ;;  %vm227_vm5 = vcmp.ge.f32.partialorder %v507_v31, 0.0 }
 0x22d   :  { %v244_v30 = vadd.f32 1.0, %v240_v27  ;;  %v241_v33 = vmul.f32 0.3275911, %v237_v29  ;;  %v296_v41 = vmul.f32 %v292_v38, %v236_v23  ;;  %v293_v42 = vsub.f32 0.0, %v237_v29 }
 0x22e   :  { %v242_v32 = vadd.f32 1.0, %v238_v28  ;;  %v239_v36 = vmul.f32 0.3275911, %v235_v34  ;;  %v294_v45 = vmul.f32 %v290_v39, %v234_v26  ;;  %v291_v47 = vsub.f32 0.0, %v235_v34 }
 0x22f   :  { %399 = vrcp.f32 %v244_v30  ;;  %v245_v35 = vadd.f32 1.0, %v241_v33  ;;  %v302_v50 = vmul.f32 1.442695, %v296_v41  ;;  %v297_v52 = vmul.f32 %v293_v42, %v237_v29 }
 0x230   :  { %401 = vrcp.f32 %v242_v32  ;;  %v243_v37 = vadd.f32 1.0, %v239_v36  ;;  %v298_v54 = vmul.f32 1.442695, %v294_v45  ;;  %v295_v58 = vmul.f32 %v291_v47, %v235_v34 }
 0x231   :  { %403 = vrcp.f32 %v245_v35  ;;  %v304_v63 = vmul.f32 1.442695, %v297_v52  ;;  %v416_v39 = vmov -1.0   ;;  %v219_v31 = vmul.f32 0.5, %v502_v25 }
 0x232   :  { %405 = vrcp.f32 %v243_v37  ;;  %v300_v4 = vmul.f32 1.442695, %v295_v58  ;;  %v232_v41 = vsel %vm228_vm2, 1.0, %v416_v39  ;;  %v233_v52 = vsel %vm229_vm4, 1.0, %v416_v39 }
 0x233   :  { %407 = vpow2.f32 %v302_v50  ;;  %v218_v50 = vmul.f32 0.5, %v488_v17  ;;  %v221_v58 = vmul.f32 0.5, %v493_v20 }
 0x234   :  { %409 = vpow2.f32 %v298_v54 }
 0x235   :  { %411 = vpow2.f32 %v304_v63 }
 0x236   :  { %413 = vpow2.f32 %v300_v4 }
 0x239   :  { %v400_v40 = vpop.eup %399 }
 0x23a   :  { %v402_v43 = vpop.eup %401  ;;  %v256_v44 = vmul.f32 1.0614054, %v400_v40 }
 0x23b   :  { %v254_v46 = vmul.f32 1.0614054, %v402_v43  ;;  %v404_v49 = vpop.eup %403 }
 0x23c   :  { %v260_v48 = vadd.f32 -1.4531521, %v256_v44  ;;  %v257_v55 = vmul.f32 1.0614054, %v404_v49  ;;  %v406_v56 = vpop.eup %405 }
 0x23d   :  { %v258_v51 = vadd.f32 -1.4531521, %v254_v46  ;;  %v255_v61 = vmul.f32 1.0614054, %v406_v56  ;;  %v408_v27 = vpop.eup %407  ;;  %v220_v46 = vmul.f32 0.5, %v486_v15 }
 0x23e   :  { %v264_v53 = vmul.f32 %v400_v40, %v260_v48  ;;  %v261_v60 = vadd.f32 -1.4531521, %v257_v55  ;;  %v410_v29 = vpop.eup %409 }
 0x23f   :  { %v262_v57 = vmul.f32 %v402_v43, %v258_v51  ;;  %v259_v2 = vadd.f32 -1.4531521, %v255_v61  ;;  %v412_v38 = vpop.eup %411 }
 0x240   :  { %v268_v59 = vadd.f32 1.4214138, %v264_v53  ;;  %v265_v1 = vmul.f32 %v404_v49, %v261_v60  ;;  %v414_v45 = vpop.eup %413 }
 0x241   :  { %v266_v62 = vadd.f32 1.4214138, %v262_v57  ;;  %v263_v7 = vmul.f32 %v406_v56, %v259_v2  ;;  %v231_v57 = vsel %vm227_vm5, 1.0, %v416_v39 }
 0x242   :  { %v272_v0 = vmul.f32 %v400_v40, %v268_v59  ;;  %v269_v6 = vadd.f32 1.4214138, %v265_v1 }
 0x243   :  { %v270_v3 = vmul.f32 %v402_v43, %v266_v62  ;;  %v267_v11 = vadd.f32 1.4214138, %v263_v7 }
 0x244   :  { %v276_v5 = vadd.f32 -0.28449672, %v272_v0  ;;  %v273_v10 = vmul.f32 %v404_v49, %v269_v6 }
 0x245   :  { %v274_v8 = vadd.f32 -0.28449672, %v270_v3  ;;  %v271_v16 = vmul.f32 %v406_v56, %v267_v11 }
 0x246   :  { %v280_v9 = vmul.f32 %v400_v40, %v276_v5  ;;  %v277_v14 = vadd.f32 -0.28449672, %v273_v10 }
 0x247   :  { %v278_v12 = vmul.f32 %v402_v43, %v274_v8  ;;  %v275_v26 = vadd.f32 -0.28449672, %v271_v16 }
 0x248   :  { %v284_v13 = vadd.f32 0.2548296, %v280_v9  ;;  %v281_v23 = vmul.f32 %v404_v49, %v277_v14 }
 0x249   :  { %v282_v18 = vadd.f32 0.2548296, %v278_v12  ;;  %v279_v33 = vmul.f32 %v406_v56, %v275_v26 }
 0x24a   :  { %v288_v21 = vmul.f32 %v400_v40, %v284_v13  ;;  %v285_v32 = vadd.f32 0.2548296, %v281_v23  ;;  %v230_v40 = vsel %vm226_vm3, 1.0, %v416_v39 }
 0x24b   :  { %v286_v28 = vmul.f32 %v402_v43, %v282_v18  ;;  %v283_v37 = vadd.f32 0.2548296, %v279_v33 }
 0x24c   :  { %v308_v30 = vmul.f32 %v408_v27, %v288_v21  ;;  %v289_v36 = vmul.f32 %v404_v49, %v285_v32 }
 0x24d   :  { %v306_v34 = vmul.f32 %v410_v29, %v286_v28  ;;  %v287_v43 = vmul.f32 %v406_v56, %v283_v37 }
 0x24e   :  { %v312_v35 = vsub.f32 1.0, %v308_v30  ;;  %v309_v19 = vmul.f32 %v412_v38, %v289_v36 }
 0x24f   :  { %v310_v42 = vsub.f32 1.0, %v306_v34  ;;  %v307_v49 = vmul.f32 %v414_v45, %v287_v43 }
 0x250   :  { %v316_v44 = vmul.f32 %v312_v35, %v232_v41  ;;  %v313_v48 = vsub.f32 1.0, %v309_v19 }
 0x251   :  { %v314_v22 = vmul.f32 %v310_v42, %v230_v40  ;;  %v311_v55 = vsub.f32 1.0, %v307_v49 }
 0x252   :  { %v320_v47 = vadd.f32 1.0, %v316_v44  ;;  %v317_v54 = vmul.f32 %v313_v48, %v233_v52 }
 0x253   :  { %v318_v51 = vadd.f32 1.0, %v314_v22  ;;  %v315_v59 = vmul.f32 %v311_v55, %v231_v57 }
 0x254   :  { %v324_v53 = vmul.f32 %v320_v47, %v220_v46  ;;  %v321_v15 = vadd.f32 1.0, %v317_v54 }
 0x255   :  { %v322_v24 = vmul.f32 %v318_v51, %v218_v50  ;;  %v319_v61 = vadd.f32 1.0, %v315_v59 }
 0x256   :  { %v364_v56 = vpack.c.bf16 %v324_v53, %v324_v53  ;;  %v325_v17 = vmul.f32 %v321_v15, %v221_v58 }
 0x257   :  { %v362_v60 = vpack.c.bf16 %v322_v24, %v322_v24  ;;  %v323_v63 = vmul.f32 %v319_v61, %v219_v31 }
 0x258   :  { %345 = vst.msk [vmem:[%s539_s5 + $0x8] sm:$0xf] %vm342_vm6, %v364_v56  ;;  %v365_v62 = vpack.c.bf16 %v325_v17, %v325_v17 }
 0x259   :  { %343 = vst.msk [vmem:[%s539_s5] sm:$0xf] %vm342_vm6, %v362_v60  ;;  %v363_v20 = vpack.c.bf16 %v323_v63, %v323_v63 }
 0x25a   :  { %346 = vst.msk [vmem:[%s539_s5 + $0xc] sm:$0xf] %vm342_vm6, %v365_v62 }
 0x25b   :  { %344 = vst.msk [vmem:[%s539_s5 + $0x4] sm:$0xf] %vm342_vm6, %v363_v20 }

</bundles_post_ra>
